<compile_context>
chip_gen: v7x
topology: tpu7x:2x2x1
jax: 0.10.0
libtpu: 0.0.40
codegen_flags: <defaults>
</compile_context>

<pallas_src>
import functools

import jax
import jax.numpy as jnp
from jax.experimental import pallas as pl
from jax.experimental.pallas import tpu as pltpu


def _round_up(x, m):
    return ((x + m - 1) // m) * m


def _mlp_kernel(num_convs, *refs):
    # refs: x, batch, w1, b1, [wc_stack, bc_stack], w2, b2, sum_out, cnt_out
    x_ref, batch_ref, w1_ref, b1_ref = refs[0], refs[1], refs[2], refs[3]
    idx = 4
    if num_convs > 0:
        wc_ref, bc_ref = refs[idx], refs[idx + 1]
        idx += 2
    w2_ref, b2_ref, sum_ref, cnt_ref = refs[idx], refs[idx + 1], refs[idx + 2], refs[idx + 3]

    # ---- fc1 + ReLU.  K = in_features (2): one tiny MXU pass per tile.
    h = jnp.dot(x_ref[...], w1_ref[...], preferred_element_type=jnp.float32)
    h = jnp.maximum(h + b1_ref[...], 0.0)            # (TILE_N, H) f32

    # ---- hidden Linear+ReLU layers: full-width H x H matmuls on the MXU.
    # Weights are stacked (one input DMA); may be bf16 - accumulate in f32.
    for li in range(num_convs):
        w = wc_ref[li]                               # (H, H)
        b = bc_ref[li]                               # (1, H) f32
        h = jnp.dot(h.astype(w.dtype), w, preferred_element_type=jnp.float32)
        h = jnp.maximum(h + b, 0.0)

    # ---- fc2 (H -> 1) + ReLU as a lane reduction (avoids width-1 MXU pass).
    w2 = w2_ref[...].astype(jnp.float32)             # (1, H), zero-padded
    y = jnp.sum(h * w2, axis=-1, keepdims=True)      # (TILE_N, 1)
    y = jnp.maximum(y + b2_ref[...], 0.0)

    # ---- per-graph partial sums / counts for this node tile (mean pool).
    # Padded nodes carry batch id -1 and therefore match no graph lane.
    seg = batch_ref[...]                             # (TILE_N, 1) int32
    b_pad = sum_ref.shape[-1]
    gids = jax.lax.broadcasted_iota(jnp.int32, (seg.shape[0], b_pad), 1)
    onehot = (seg == gids).astype(jnp.float32)       # (TILE_N, B_pad)
    sum_ref[0] = jnp.sum(onehot * y, axis=0, keepdims=True)   # (1, B_pad)
    cnt_ref[0] = jnp.sum(onehot, axis=0, keepdims=True)       # (1, B_pad)


def mlp_forward(x, batch, params, num_graphs, *, tile_n=512,
                matmul_dtype=jnp.float32):
    """x: (N, 2) f32, batch: (N,) int32 graph ids in [0, num_graphs)."""
    (w1, b1), convs, (w2, b2) = params
    num_convs = len(convs)
    n_nodes, in_feat = x.shape
    hidden = w1.shape[1]

    f32 = jnp.float32
    h_pad = _round_up(hidden, 128)                   # lane-dense hidden dim
    b_pad = _round_up(max(num_graphs, 1), 128)       # lane-dense pooled output
    n_pad = _round_up(max(n_nodes, 1), tile_n)
    num_tiles = n_pad // tile_n

    # ---- node-side padding (outside the hot path): zero features, batch=-1
    xp = jnp.zeros((n_pad, in_feat), f32).at[:n_nodes].set(x.astype(f32))
    segp = jnp.full((n_pad, 1), -1, jnp.int32).at[:n_nodes, 0].set(
        batch.astype(jnp.int32))

    # ---- weight-side zero padding to 128 lanes (ReLU(0)=0 keeps pads exact)
    w1p = jnp.zeros((in_feat, h_pad), f32).at[:, :hidden].set(w1.astype(f32))
    b1p = jnp.zeros((1, h_pad), f32).at[:, :hidden].set(b1.astype(f32))
    w2p = jnp.zeros((1, h_pad), f32).at[:, :hidden].set(w2.astype(f32).T)
    b2p = b2.astype(f32).reshape(1, 1)

    args = [xp, segp, w1p, b1p]
    in_specs = [
        pl.BlockSpec((tile_n, in_feat), lambda i: (i, 0)),     # x tile
        pl.BlockSpec((tile_n, 1), lambda i: (i, 0)),           # batch ids tile
        pl.BlockSpec((in_feat, h_pad), lambda i: (0, 0)),      # w1 (resident)
        pl.BlockSpec((1, h_pad), lambda i: (0, 0)),            # b1
    ]
    if num_convs > 0:
        wcs = jnp.zeros((num_convs, h_pad, h_pad), f32)
        bcs = jnp.zeros((num_convs, 1, h_pad), f32)
        for li, (wc, bc) in enumerate(convs):
            wcs = wcs.at[li, :hidden, :hidden].set(wc.astype(f32))
            bcs = bcs.at[li, :, :hidden].set(bc.astype(f32))
        args += [wcs.astype(matmul_dtype), bcs]                # bf16 on v6e/v7x
        in_specs += [
            pl.BlockSpec((num_convs, h_pad, h_pad), lambda i: (0, 0, 0)),
            pl.BlockSpec((num_convs, 1, h_pad), lambda i: (0, 0, 0)),
        ]
    args += [w2p, b2p]
    in_specs += [
        pl.BlockSpec((1, h_pad), lambda i: (0, 0)),            # w2 row
        pl.BlockSpec((1, 1), lambda i: (0, 0)),                # b2 scalar
    ]

    out_shape = (
        jax.ShapeDtypeStruct((num_tiles, 1, b_pad), f32),      # partial sums
        jax.ShapeDtypeStruct((num_tiles, 1, b_pad), f32),      # partial counts
    )
    out_specs = (
        pl.BlockSpec((1, 1, b_pad), lambda i: (i, 0, 0)),
        pl.BlockSpec((1, 1, b_pad), lambda i: (i, 0, 0)),
    )

    psum, pcnt = pl.pallas_call(
        functools.partial(_mlp_kernel, num_convs),
        grid=(num_tiles,),
        in_specs=in_specs,
        out_specs=out_specs,
        out_shape=out_shape,
        compiler_params=pltpu.CompilerParams(
            dimension_semantics=("parallel",),     # shards node tiles over TCs
            vmem_limit_bytes=32 * 1024 * 1024,     # explicit, fits all gens
        ),
    )(*args)

    sums = jnp.sum(psum[:, 0, :], axis=0)          # (B_pad,)
    cnts = jnp.sum(pcnt[:, 0, :], axis=0)
    return (sums / jnp.maximum(cnts, 1.0))[:num_graphs]


def init_params(key, num_layers, hidden):
    """Deterministic init. Weights stored pre-transposed as (in, out)."""
    keys = jax.random.split(key, 2 * num_layers)
    k = iter(keys)

    def linear(in_f, out_f):
        bound = 1.0 / jnp.sqrt(jnp.float32(in_f))
        w = jax.random.uniform(next(k), (in_f, out_f), jnp.float32, -bound, bound)
        b = jax.random.uniform(next(k), (1, out_f), jnp.float32, -bound, bound)
        return w, b

    fc1 = linear(2, hidden)
    convs = [linear(hidden, hidden) for _ in range(num_layers - 2)]
    fc2 = linear(hidden, 1)
    return fc1, convs, fc2


def reference_forward(x, batch, params, num_graphs):
    (w1, b1), convs, (w2, b2) = params
    h = jnp.maximum(x @ w1 + b1, 0.0)
    for (wc, bc) in convs:
        h = jnp.maximum(h @ wc + bc, 0.0)
    y = jnp.maximum(h @ w2 + b2, 0.0)[:, 0]
    onehot = (batch[None, :] == jnp.arange(num_graphs)[:, None]).astype(jnp.float32)
    return (onehot @ y) / jnp.maximum(onehot.sum(axis=1), 1.0)


if __name__ == "__main__":
    num_layers = 4     # -> fc1, 2 hidden Linear+ReLU layers, fc2
    hidden = 32
    n_nodes = 8        # total nodes across the batch of graphs
    num_graphs = 2

    key = jax.random.PRNGKey(0)
    k_x, k_p = jax.random.split(key)

    x = jax.random.normal(k_x, (n_nodes, 2), dtype=jnp.float32)
    batch = jnp.array([0, 0, 0, 0, 1, 1, 1, 1], dtype=jnp.int32)
    params = init_params(k_p, num_layers, hidden)

    ref = reference_forward(x, batch, params, num_graphs)

    # f32 matmul path (exactness check against the f32 reference).
    out = jax.block_until_ready(
        mlp_forward(x, batch, params, num_graphs, tile_n=256))
    assert out.shape == (num_graphs,)
    assert jnp.allclose(out, ref, atol=1e-5, rtol=1e-5), (out, ref)

    # bf16 matmul path (preferred on v6e / v7x MXU), f32 accumulation.
    out_bf16 = jax.block_until_ready(
        mlp_forward(x, batch, params, num_graphs, tile_n=256,
                    matmul_dtype=jnp.bfloat16))
    assert out_bf16.shape == (num_graphs,)
    assert jnp.allclose(out_bf16, ref, atol=5e-2, rtol=5e-2), (out_bf16, ref)

    print("KERNEL_OK")
</pallas_src>

<mosaic_0001>
module attributes {stable_mosaic.version = 11 : i64} {
  func.func @_mlp_kernel(%arg0: i32, %arg1: memref<256x2xf32, #tpu.memory_space<vmem>>, %arg2: memref<256x1xi32, #tpu.memory_space<vmem>>, %arg3: memref<2x128xf32, #tpu.memory_space<vmem>>, %arg4: memref<1x128xf32, #tpu.memory_space<vmem>>, %arg5: memref<2x128x128xf32, #tpu.memory_space<vmem>>, %arg6: memref<2x1x128xf32, #tpu.memory_space<vmem>>, %arg7: memref<1x128xf32, #tpu.memory_space<vmem>>, %arg8: memref<1x1xf32, #tpu.memory_space<vmem>>, %arg9: memref<1x1x128xf32, #tpu.memory_space<vmem>>, %arg10: memref<1x1x128xf32, #tpu.memory_space<vmem>>) attributes {dimension_semantics = [#tpu.dimension_semantics<parallel>], iteration_bounds = array<i64: 1>, scalar_prefetch = 0 : i64, scratch_operands = 0 : i64, tpu.core_type = #tpu.core_type<tc>, window_params = [{transform_indices = @transform_0, window_bounds = array<i64: 256, 2>}, {transform_indices = @transform_1, window_bounds = array<i64: 256, 1>}, {pipeline_mode = #tpu.pipeline_mode<synchronous>, transform_indices = @transform_2, window_bounds = array<i64: 2, 128>}, {pipeline_mode = #tpu.pipeline_mode<synchronous>, transform_indices = @transform_3, window_bounds = array<i64: 1, 128>}, {pipeline_mode = #tpu.pipeline_mode<synchronous>, transform_indices = @transform_4, window_bounds = array<i64: 2, 128, 128>}, {pipeline_mode = #tpu.pipeline_mode<synchronous>, transform_indices = @transform_5, window_bounds = array<i64: 2, 1, 128>}, {pipeline_mode = #tpu.pipeline_mode<synchronous>, transform_indices = @transform_6, window_bounds = array<i64: 1, 128>}, {pipeline_mode = #tpu.pipeline_mode<synchronous>, transform_indices = @transform_7, window_bounds = array<i64: 1, 1>}, {transform_indices = @transform_8, window_bounds = array<i64: 1, 1, 128>}, {transform_indices = @transform_9, window_bounds = array<i64: 1, 1, 128>}]} {
    %c0 = arith.constant 0 : index
    %c0_0 = arith.constant 0 : index
    %0 = vector.load %arg1[%c0, %c0_0] : memref<256x2xf32, #tpu.memory_space<vmem>>, vector<256x2xf32>
    %c0_1 = arith.constant 0 : index
    %c0_2 = arith.constant 0 : index
    %1 = vector.load %arg3[%c0_1, %c0_2] : memref<2x128xf32, #tpu.memory_space<vmem>>, vector<2x128xf32>
    %cst = arith.constant dense<0.000000e+00> : vector<256x128xf32>
    %2 = tpu.matmul %0, %1, %cst {dimension_numbers = #tpu.dot_dimension_numbers<[1], [0], [0], [1], [0, 0, 1, 1], [], []>} : vector<256x2xf32>, vector<2x128xf32>, vector<256x128xf32> -> vector<256x128xf32>
    %c0_3 = arith.constant 0 : index
    %c0_4 = arith.constant 0 : index
    %3 = vector.load %arg4[%c0_3, %c0_4] : memref<1x128xf32, #tpu.memory_space<vmem>>, vector<1x128xf32>
    %4 = vector.broadcast %3 : vector<1x128xf32> to vector<256x128xf32>
    %5 = arith.addf %2, %4 : vector<256x128xf32>
    %cst_5 = arith.constant 0.000000e+00 : f32
    %6 = vector.broadcast %cst_5 : f32 to vector<256x128xf32>
    %7 = arith.maximumf %5, %6 : vector<256x128xf32>
    %c0_6 = arith.constant 0 : index
    %c0_7 = arith.constant 0 : index
    %c0_8 = arith.constant 0 : index
    %8 = vector.load %arg5[%c0_6, %c0_7, %c0_8] : memref<2x128x128xf32, #tpu.memory_space<vmem>>, vector<1x128x128xf32>
    %9 = vector.shape_cast %8 : vector<1x128x128xf32> to vector<128x128xf32>
    %c0_9 = arith.constant 0 : index
    %c0_10 = arith.constant 0 : index
    %c0_11 = arith.constant 0 : index
    %10 = vector.load %arg6[%c0_9, %c0_10, %c0_11] : memref<2x1x128xf32, #tpu.memory_space<vmem>>, vector<1x1x128xf32>
    %11 = vector.shape_cast %10 : vector<1x1x128xf32> to vector<1x128xf32>
    %cst_12 = arith.constant dense<0.000000e+00> : vector<256x128xf32>
    %12 = tpu.matmul %7, %9, %cst_12 {dimension_numbers = #tpu.dot_dimension_numbers<[1], [0], [0], [1], [0, 0, 1, 1], [], []>} : vector<256x128xf32>, vector<128x128xf32>, vector<256x128xf32> -> vector<256x128xf32>
    %13 = vector.broadcast %11 : vector<1x128xf32> to vector<256x128xf32>
    %14 = arith.addf %12, %13 : vector<256x128xf32>
    %cst_13 = arith.constant 0.000000e+00 : f32
    %15 = vector.broadcast %cst_13 : f32 to vector<256x128xf32>
    %16 = arith.maximumf %14, %15 : vector<256x128xf32>
    %c1 = arith.constant 1 : index
    %c0_14 = arith.constant 0 : index
    %c0_15 = arith.constant 0 : index
    %17 = vector.load %arg5[%c1, %c0_14, %c0_15] : memref<2x128x128xf32, #tpu.memory_space<vmem>>, vector<1x128x128xf32>
    %18 = vector.shape_cast %17 : vector<1x128x128xf32> to vector<128x128xf32>
    %c1_16 = arith.constant 1 : index
    %c0_17 = arith.constant 0 : index
    %c0_18 = arith.constant 0 : index
    %19 = vector.load %arg6[%c1_16, %c0_17, %c0_18] : memref<2x1x128xf32, #tpu.memory_space<vmem>>, vector<1x1x128xf32>
    %20 = vector.shape_cast %19 : vector<1x1x128xf32> to vector<1x128xf32>
    %cst_19 = arith.constant dense<0.000000e+00> : vector<256x128xf32>
    %21 = tpu.matmul %16, %18, %cst_19 {dimension_numbers = #tpu.dot_dimension_numbers<[1], [0], [0], [1], [0, 0, 1, 1], [], []>} : vector<256x128xf32>, vector<128x128xf32>, vector<256x128xf32> -> vector<256x128xf32>
    %22 = vector.broadcast %20 : vector<1x128xf32> to vector<256x128xf32>
    %23 = arith.addf %21, %22 : vector<256x128xf32>
    %cst_20 = arith.constant 0.000000e+00 : f32
    %24 = vector.broadcast %cst_20 : f32 to vector<256x128xf32>
    %25 = arith.maximumf %23, %24 : vector<256x128xf32>
    %c0_21 = arith.constant 0 : index
    %c0_22 = arith.constant 0 : index
    %26 = vector.load %arg7[%c0_21, %c0_22] : memref<1x128xf32, #tpu.memory_space<vmem>>, vector<1x128xf32>
    %27 = vector.broadcast %26 : vector<1x128xf32> to vector<256x128xf32>
    %28 = arith.mulf %25, %27 : vector<256x128xf32>
    %cst_23 = arith.constant dense<0.000000e+00> : vector<256xf32>
    %29 = vector.multi_reduction <add>, %28, %cst_23 [1] : vector<256x128xf32> to vector<256xf32>
    %30 = vector.shape_cast %29 : vector<256xf32> to vector<256x1xf32>
    %c0_24 = arith.constant 0 : index
    %c0_25 = arith.constant 0 : index
    %31 = vector.load %arg8[%c0_24, %c0_25] : memref<1x1xf32, #tpu.memory_space<vmem>>, vector<1x1xf32>
    %32 = vector.broadcast %31 : vector<1x1xf32> to vector<256x1xf32>
    %33 = arith.addf %30, %32 : vector<256x1xf32>
    %cst_26 = arith.constant 0.000000e+00 : f32
    %34 = vector.broadcast %cst_26 : f32 to vector<256x1xf32>
    %35 = arith.maximumf %33, %34 : vector<256x1xf32>
    %c0_27 = arith.constant 0 : index
    %c0_28 = arith.constant 0 : index
    %36 = vector.load %arg2[%c0_27, %c0_28] : memref<256x1xi32, #tpu.memory_space<vmem>>, vector<256x1xi32>
    %37 = tpu.iota {dimensions = array<i32: 1>} : vector<256x128xi32>
    %38 = vector.broadcast %36 : vector<256x1xi32> to vector<256x128xi32>
    %39 = arith.cmpi eq, %38, %37 : vector<256x128xi32>
    %40 = arith.extui %39 : vector<256x128xi1> to vector<256x128xi32>
    %41 = arith.sitofp %40 : vector<256x128xi32> to vector<256x128xf32>
    %42 = vector.broadcast %35 : vector<256x1xf32> to vector<256x128xf32>
    %43 = arith.mulf %41, %42 : vector<256x128xf32>
    %cst_29 = arith.constant dense<0.000000e+00> : vector<128xf32>
    %44 = vector.multi_reduction <add>, %43, %cst_29 [0] : vector<256x128xf32> to vector<128xf32>
    %45 = vector.shape_cast %44 : vector<128xf32> to vector<1x128xf32>
    %c0_30 = arith.constant 0 : index
    %c0_31 = arith.constant 0 : index
    %c0_32 = arith.constant 0 : index
    %46 = vector.load %arg9[%c0_30, %c0_31, %c0_32] : memref<1x1x128xf32, #tpu.memory_space<vmem>>, vector<1x1x128xf32>
    %47 = vector.shape_cast %46 : vector<1x1x128xf32> to vector<1x128xf32>
    %48 = vector.shape_cast %45 : vector<1x128xf32> to vector<1x1x128xf32>
    tpu.vector_store %arg9[%c0_30, %c0_31, %c0_32], %48 {strides = array<i32>} : memref<1x1x128xf32, #tpu.memory_space<vmem>>, vector<1x1x128xf32>,
    %cst_33 = arith.constant dense<0.000000e+00> : vector<128xf32>
    %49 = vector.multi_reduction <add>, %41, %cst_33 [0] : vector<256x128xf32> to vector<128xf32>
    %50 = vector.shape_cast %49 : vector<128xf32> to vector<1x128xf32>
    %c0_34 = arith.constant 0 : index
    %c0_35 = arith.constant 0 : index
    %c0_36 = arith.constant 0 : index
    %51 = vector.load %arg10[%c0_34, %c0_35, %c0_36] : memref<1x1x128xf32, #tpu.memory_space<vmem>>, vector<1x1x128xf32>
    %52 = vector.shape_cast %51 : vector<1x1x128xf32> to vector<1x128xf32>
    %53 = vector.shape_cast %50 : vector<1x128xf32> to vector<1x1x128xf32>
    tpu.vector_store %arg10[%c0_34, %c0_35, %c0_36], %53 {strides = array<i32>} : memref<1x1x128xf32, #tpu.memory_space<vmem>>, vector<1x1x128xf32>,
    return
  }
  func.func @transform_0(%arg0: i32) -> (i32, i32) {
    %c0_i32 = arith.constant 0 : i32
    %c0_i32_0 = arith.constant 0 : i32
    return %arg0, %c0_i32 : i32, i32
  }
  func.func @transform_1(%arg0: i32) -> (i32, i32) {
    %c0_i32 = arith.constant 0 : i32
    %c0_i32_0 = arith.constant 0 : i32
    return %arg0, %c0_i32 : i32, i32
  }
  func.func @transform_2(%arg0: i32) -> (i32, i32) {
    %c0_i32 = arith.constant 0 : i32
    %c0_i32_0 = arith.constant 0 : i32
    %c0_i32_1 = arith.constant 0 : i32
    return %c0_i32, %c0_i32_0 : i32, i32
  }
  func.func @transform_3(%arg0: i32) -> (i32, i32) {
    %c0_i32 = arith.constant 0 : i32
    %c0_i32_0 = arith.constant 0 : i32
    %c0_i32_1 = arith.constant 0 : i32
    return %c0_i32, %c0_i32_0 : i32, i32
  }
  func.func @transform_4(%arg0: i32) -> (i32, i32, i32) {
    %c0_i32 = arith.constant 0 : i32
    %c0_i32_0 = arith.constant 0 : i32
    %c0_i32_1 = arith.constant 0 : i32
    %c0_i32_2 = arith.constant 0 : i32
    return %c0_i32, %c0_i32_0, %c0_i32_1 : i32, i32, i32
  }
  func.func @transform_5(%arg0: i32) -> (i32, i32, i32) {
    %c0_i32 = arith.constant 0 : i32
    %c0_i32_0 = arith.constant 0 : i32
    %c0_i32_1 = arith.constant 0 : i32
    %c0_i32_2 = arith.constant 0 : i32
    return %c0_i32, %c0_i32_0, %c0_i32_1 : i32, i32, i32
  }
  func.func @transform_6(%arg0: i32) -> (i32, i32) {
    %c0_i32 = arith.constant 0 : i32
    %c0_i32_0 = arith.constant 0 : i32
    %c0_i32_1 = arith.constant 0 : i32
    return %c0_i32, %c0_i32_0 : i32, i32
  }
  func.func @transform_7(%arg0: i32) -> (i32, i32) {
    %c0_i32 = arith.constant 0 : i32
    %c0_i32_0 = arith.constant 0 : i32
    %c0_i32_1 = arith.constant 0 : i32
    return %c0_i32, %c0_i32_0 : i32, i32
  }
  func.func @transform_8(%arg0: i32) -> (i32, i32, i32) {
    %c0_i32 = arith.constant 0 : i32
    %c0_i32_0 = arith.constant 0 : i32
    %c0_i32_1 = arith.constant 0 : i32
    return %arg0, %c0_i32, %c0_i32_0 : i32, i32, i32
  }
  func.func @transform_9(%arg0: i32) -> (i32, i32, i32) {
    %c0_i32 = arith.constant 0 : i32
    %c0_i32_0 = arith.constant 0 : i32
    %c0_i32_1 = arith.constant 0 : i32
    return %arg0, %c0_i32, %c0_i32_0 : i32, i32, i32
  }
}

</mosaic_0001>

<bundles_post_ra>
// kernel: tpu_custom_call.1
= control target key start
LH: loop header
LB: loop body
LE: loop exit
PB: predicated region body
PF: predicated region fallthrough
CT: control target
= control target key end

     0   :  { %s3019_s0 = inlined_call_operand.vmem [shape: f32[256,2], index: 0, kind: input, shape index: {}]   ;;  %s3020_s1 = inlined_call_operand.vmem [shape: s32[256,1], index: 1, kind: input, shape index: {}]   ;;  %s3021_s2 = inlined_call_operand.vmem [shape: f32[2,128], index: 2, kind: input, shape index: {}]   ;;  %s3022_s3 = inlined_call_operand.vmem [shape: f32[1,128], index: 3, kind: input, shape index: {}]   ;;  %s3023_s4 = inlined_call_operand.vmem [shape: f32[2,128,128], index: 4, kind: input, shape index: {}]   ;;  %s3024_s5 = inlined_call_operand.vmem [shape: f32[2,1,128], index: 5, kind: input, shape index: {}]   ;;  %s3025_s6 = inlined_call_operand.vmem [shape: f32[1,128], index: 6, kind: input, shape index: {}]   ;;  %s3026_s7 = inlined_call_operand.<no memory space> [shape: f32[1,1], index: 7, kind: input, shape index: {}]   ;;  %s3027_s8 = inlined_call_operand.hbm [shape: f32[1,1,128], index: 8, kind: output, shape index: {0}]   ;;  %s3028_s9 = inlined_call_operand.hbm [shape: f32[1,1,128], index: 9, kind: output, shape index: {1}]  }
   0x1   :  { %v15_v0 = vstv %s3026_s7 }
   0x2   :  { %16 = vst [vmem:[#allocation2] sm:$0x1] %v15_v0 }
   0x3   :  { %17 = vsyncpa [#allocation4], 0  ;;  %v67_v1 = vld [vmem:[%s3021_s2] sm:$0x3]  ;;  %vm172_vm0 = vcmask 1041408   ;;  %vm75_vm1 = vcmask 15360  }
   0x4   :  { %v35_v2 = vld [vmem:[%s3019_s0] sm:$0xff]  ;;  %v36_v3 = vld [vmem:[%s3019_s0 + $0x8] sm:$0xff]  ;;  %1907 = vmatprep.subr.msk.mxu0 %vm172_vm0, %v67_v1  ;;  %v37_v4 = vld [vmem:[%s3019_s0 + $0x10] sm:$0xff]  ;;  %2181 = vmatprep.subr.msk.mxu1 %vm172_vm0, %v67_v1 }
   0x5   :  { %1909 = vmatprep.mubr.msk.f32.mxu0 %vm75_vm1, %v35_v2  ;;  %1908 = vmatpush3.msk.msra.mxu0 %vm172_vm0, %v67_v1  ;;  %v38_v5 = vld [vmem:[%s3019_s0 + $0x18] sm:$0xff]  ;;  %v39_v6 = vld [vmem:[%s3019_s0 + $0x20] sm:$0xff]  ;;  %v52_v8 = vld [vmem:[%s3019_s0 + $0x88] sm:$0xff] }
   0x6   :  { %1910 = vmatmul.mubr.msk.f32.vlgmr.msra.gmra.mrb[0].mxu0 %vm75_vm1, %v36_v3  ;;  %2182 = vmatpush3.msk.msra.mxu1 %vm172_vm0, %v67_v1  ;;  %v51_v7 = vld [vmem:[%s3019_s0 + $0x80] sm:$0xff]  ;;  %v53_v9 = vld [vmem:[%s3019_s0 + $0x90] sm:$0xff]  ;;  %v40_v10 = vld [vmem:[%s3019_s0 + $0x28] sm:$0xff] }
   0x7   :  { %1912 = vmatprep.mubr.msk.f32.mxu0 %vm75_vm1, %v37_v4  ;;  %1933 = vmatprep.mubr.msk.f32.mxu1 %vm75_vm1, %v51_v7  ;;  %v54_v11 = vld [vmem:[%s3019_s0 + $0x98] sm:$0xff]  ;;  %v41_v12 = vld [vmem:[%s3019_s0 + $0x30] sm:$0xff]  ;;  %v55_v13 = vld [vmem:[%s3019_s0 + $0xa0] sm:$0xff] }
   0x8   :  { %1934 = vmatmul.mubr.msk.f32.vlgmr.msra.gmra.mrb[0].mxu1 %vm75_vm1, %v52_v8  ;;  %v433_v14 = vld [vmem:[%s3023_s4] sm:$0xff]  ;;  %v434_v15 = vld [vmem:[%s3023_s4 + $0x8] sm:$0xff]  ;;  %v435_v16 = vld [vmem:[%s3023_s4 + $0x10] sm:$0xff] }
   0x9   :  { %1936 = vmatprep.mubr.msk.f32.mxu1 %vm75_vm1, %v53_v9  ;;  %v42_v17 = vld [vmem:[%s3019_s0 + $0x38] sm:$0xff]  ;;  %v56_v18 = vld [vmem:[%s3019_s0 + $0xa8] sm:$0xff]  ;;  %v2117_v19 = vpack.c.bf16 %v434_v15, %v433_v14  ;;  %v43_v21 = vld [vmem:[%s3019_s0 + $0x40] sm:$0xff] }
   0xa   :  { %1913 = vmatmul.mubr.msk.f32.gmra.mrb[2].mxu0 %vm75_vm1, %v38_v5  ;;  %v436_v20 = vld [vmem:[%s3023_s4 + $0x18] sm:$0xff]  ;;  %v57_v22 = vld [vmem:[%s3019_s0 + $0xb0] sm:$0xff]  ;;  %v437_v24 = vld [vmem:[%s3023_s4 + $0x20] sm:$0xff] }
   0xb   :  { %1915 = vmatprep.mubr.msk.f32.mxu0 %vm75_vm1, %v39_v6  ;;  %2118 = vmatprep.subr.bf16.mxu1 %v2117_v19  ;;  %v2121_v23 = vpack.c.bf16 %v436_v20, %v435_v16  ;;  %v438_v25 = vld [vmem:[%s3023_s4 + $0x28] sm:$0xff] }
   0xc   :  { %1937 = vmatmul.mubr.msk.f32.gmra.mrb[2].mxu1 %vm75_vm1, %v54_v11 }
   0xd   :  { %1939 = vmatprep.mubr.msk.f32.mxu1 %vm75_vm1, %v55_v13 }
   0xe   :  { %1916 = vmatmul.mubr.msk.f32.gmra.mrb[4].mxu0 %vm75_vm1, %v40_v10 }
   0xf   :  { %1918 = vmatprep.mubr.msk.f32.mxu0 %vm75_vm1, %v41_v12 }
  0x10   :  { %1940 = vmatmul.mubr.msk.f32.gmra.mrb[4].mxu1 %vm75_vm1, %v56_v18 }
  0x12   :  { %1919 = vmatmul.mubr.msk.f32.gmra.mrb[6].mxu0 %vm75_vm1, %v42_v17 }
  0x13   :  { %18 = vsyncpa [#allocation6], 0  ;;  %1921 = vmatprep.mubr.msk.f32.mxu0 %vm75_vm1, %v43_v21  ;;  %v44_v26 = vld [vmem:[%s3019_s0 + $0x48] sm:$0xff]  ;;  %1942 = vmatprep.mubr.msk.f32.mxu1 %vm75_vm1, %v57_v22  ;;  %v58_v27 = vld [vmem:[%s3019_s0 + $0xb8] sm:$0xff]  ;;  %v2125_v30 = vpack.c.bf16 %v438_v25, %v437_v24  ;;  %s2240_s7 = smov [#allocation3]  }
  0x14   :  { %v45_v28 = vld [vmem:[%s3019_s0 + $0x50] sm:$0xff]  ;;  %v59_v29 = vld [vmem:[%s3019_s0 + $0xc0] sm:$0xff]  ;;  %2120 = vmatpush3.bf16.msra.mxu1 %v2117_v19  ;;  %v440_v32 = vld [vmem:[%s3023_s4 + $0x38] sm:$0xff]  ;;  %s1669_s17 = sshll.u32 %s2240_s7, 4  ;;  %s1670_s17 = int_to_ptr.vmem [resolvable:$true] %s1669_s17 }
  0x15   :  { %2122 = vmatprep.subr.bf16.mxu1 %v2121_v23  ;;  %1943 = vmatmul.mubr.msk.f32.gmra.mrb[6].mxu1 %vm75_vm1, %v58_v27  ;;  %v439_v31 = vld [vmem:[%s3023_s4 + $0x30] sm:$0xff]  ;;  %v46_v33 = vld [vmem:[%s3019_s0 + $0x58] sm:$0xff]  ;;  %v60_v34 = vld [vmem:[%s3019_s0 + $0xc8] sm:$0xff] }
  0x16   :  { %1922 = vmatmul.mubr.msk.f32.gmra.mrb[8].mxu0 %vm75_vm1, %v44_v26  ;;  %1945 = vmatprep.mubr.msk.f32.mxu1 %vm75_vm1, %v59_v29  ;;  %v47_v35 = vld [vmem:[%s3019_s0 + $0x60] sm:$0xff]  ;;  %v61_v36 = vld [vmem:[%s3019_s0 + $0xd0] sm:$0xff]  ;;  %v2129_v37 = vpack.c.bf16 %v440_v32, %v439_v31  ;;  %v442_v39 = vld [vmem:[%s3023_s4 + $0x48] sm:$0xff] }
  0x17   :  { %1924 = vmatprep.mubr.msk.f32.mxu0 %vm75_vm1, %v45_v28  ;;  %v441_v38 = vld [vmem:[%s3023_s4 + $0x40] sm:$0xff]  ;;  %v48_v40 = vld [vmem:[%s3019_s0 + $0x68] sm:$0xff]  ;;  %v62_v41 = vld [vmem:[%s3019_s0 + $0xd8] sm:$0xff] }
  0x18   :  { %2124 = vmatpush3.bf16.msra.mxu1 %v2121_v23  ;;  %v49_v42 = vld [vmem:[%s3019_s0 + $0x70] sm:$0xff]  ;;  %v63_v43 = vld [vmem:[%s3019_s0 + $0xe0] sm:$0xff]  ;;  %v2133_v44 = vpack.c.bf16 %v442_v39, %v441_v38  ;;  %v444_v46 = vld [vmem:[%s3023_s4 + $0x58] sm:$0xff] }
  0x19   :  { %2126 = vmatprep.subr.bf16.mxu1 %v2125_v30  ;;  %1946 = vmatmul.mubr.msk.f32.gmra.mrb[8].mxu1 %vm75_vm1, %v60_v34  ;;  %v443_v45 = vld [vmem:[%s3023_s4 + $0x50] sm:$0xff]  ;;  %v50_v47 = vld [vmem:[%s3019_s0 + $0x78] sm:$0xff]  ;;  %v64_v48 = vld [vmem:[%s3019_s0 + $0xe8] sm:$0xff] }
  0x1a   :  { %1925 = vmatmul.mubr.msk.f32.gmra.mrb[10].mxu0 %vm75_vm1, %v46_v33  ;;  %1948 = vmatprep.mubr.msk.f32.mxu1 %vm75_vm1, %v61_v36  ;;  %v65_v49 = vld [vmem:[%s3019_s0 + $0xf0] sm:$0xff]  ;;  %v2137_v50 = vpack.c.bf16 %v444_v46, %v443_v45  ;;  %v445_v51 = vld [vmem:[%s3023_s4 + $0x60] sm:$0xff]  ;;  %v446_v52 = vld [vmem:[%s3023_s4 + $0x68] sm:$0xff] }
  0x1b   :  { %1927 = vmatprep.mubr.msk.f32.mxu0 %vm75_vm1, %v47_v35  ;;  %v66_v53 = vld [vmem:[%s3019_s0 + $0xf8] sm:$0xff]  ;;  %v2141_v54 = vpack.c.bf16 %v446_v52, %v445_v51  ;;  %v447_v55 = vld [vmem:[%s3023_s4 + $0x70] sm:$0xff]  ;;  %v1726_v58 = vld [vmem:[%s3023_s4 + $0x80] sm:$0xff] }
  0x1c   :  { %2128 = vmatpush3.bf16.msra.mxu1 %v2125_v30  ;;  %v448_v56 = vld [vmem:[%s3023_s4 + $0x78] sm:$0xff]  ;;  %v1727_v59 = vld [vmem:[%s3023_s4 + $0x88] sm:$0xff]  ;;  %v1728_v60 = vld [vmem:[%s3023_s4 + $0x90] sm:$0xff] }
  0x1d   :  { %2130 = vmatprep.subr.bf16.mxu1 %v2129_v37  ;;  %1949 = vmatmul.mubr.msk.f32.gmra.mrb[10].mxu1 %vm75_vm1, %v62_v41  ;;  %v2145_v57 = vpack.c.bf16 %v448_v56, %v447_v55  ;;  %v2149_v61 = vpack.c.bf16 %v1727_v59, %v1726_v58  ;;  %v1729_v62 = vld [vmem:[%s3023_s4 + $0x98] sm:$0xff]  ;;  %v1730_v0 = vld [vmem:[%s3023_s4 + $0xa0] sm:$0xff]  ;;  %v1731_v1 = vld [vmem:[%s3023_s4 + $0xa8] sm:$0xff] }
  0x1e   :  { %1928 = vmatmul.mubr.msk.f32.gmra.mrb[12].mxu0 %vm75_vm1, %v48_v40  ;;  %1951 = vmatprep.mubr.msk.f32.mxu1 %vm75_vm1, %v63_v43  ;;  %v2153_v63 = vpack.c.bf16 %v1729_v62, %v1728_v60  ;;  %v2157_v2 = vpack.c.bf16 %v1731_v1, %v1730_v0  ;;  %v1732_v3 = vld [vmem:[%s3023_s4 + $0xb0] sm:$0xff]  ;;  %v1733_v4 = vld [vmem:[%s3023_s4 + $0xb8] sm:$0xff]  ;;  %v1734_v6 = vld [vmem:[%s3023_s4 + $0xc0] sm:$0xff] }
  0x1f   :  { %1930 = vmatprep.mubr.msk.f32.mxu0 %vm75_vm1, %v49_v42  ;;  %2150 = vmatprep.subr.bf16.mxu0 %v2149_v61  ;;  %v2161_v5 = vpack.c.bf16 %v1733_v4, %v1732_v3  ;;  %v1735_v7 = vld [vmem:[%s3023_s4 + $0xc8] sm:$0xff]  ;;  %v1736_v9 = vld [vmem:[%s3023_s4 + $0xd0] sm:$0xff]  ;;  %v1737_v10 = vld [vmem:[%s3023_s4 + $0xd8] sm:$0xff] }
  0x20   :  { %2132 = vmatpush3.bf16.msra.mxu1 %v2129_v37  ;;  %2152 = vmatpush3.bf16.msra.mxu0 %v2149_v61  ;;  %v2165_v8 = vpack.c.bf16 %v1735_v7, %v1734_v6  ;;  %v2169_v11 = vpack.c.bf16 %v1737_v10, %v1736_v9  ;;  %v1738_v12 = vld [vmem:[%s3023_s4 + $0xe0] sm:$0xff]  ;;  %v1739_v13 = vld [vmem:[%s3023_s4 + $0xe8] sm:$0xff] }
  0x21   :  { %2134 = vmatprep.subr.bf16.mxu1 %v2133_v44  ;;  %1952 = vmatmul.mubr.msk.f32.gmra.mrb[12].mxu1 %vm75_vm1, %v64_v48  ;;  %v2173_v14 = vpack.c.bf16 %v1739_v13, %v1738_v12  ;;  %v2518_v15 = vld [vmem:[%s3022_s3] ss:$0 sm:$0xff] }
  0x22   :  { %1931 = vmatmul.mubr.msk.f32.gmra.mrb[14].mxu0 %vm75_vm1, %v50_v47  ;;  %1954 = vmatprep.mubr.msk.f32.mxu1 %vm75_vm1, %v65_v49 }
  0x23   :  { %2154 = vmatprep.subr.bf16.mxu0 %v2153_v63 }
  0x24   :  { %2136 = vmatpush3.bf16.msra.mxu1 %v2133_v44  ;;  %2156 = vmatpush3.bf16.msra.mxu0 %v2153_v63 }
  0x25   :  { %2138 = vmatprep.subr.bf16.mxu1 %v2137_v50  ;;  %1955 = vmatmul.mubr.msk.f32.gmra.mrb[14].mxu1 %vm75_vm1, %v66_v53 }
  0x26   :  { %2158 = vmatprep.subr.bf16.mxu0 %v2157_v2 }
  0x28   :  { %2140 = vmatpush3.bf16.msra.mxu1 %v2137_v50  ;;  %2160 = vmatpush3.bf16.msra.mxu0 %v2157_v2 }
  0x29   :  { %2142 = vmatprep.subr.bf16.mxu1 %v2141_v54  ;;  %2162 = vmatprep.subr.bf16.mxu0 %v2161_v5 }
  0x2c   :  { %2144 = vmatpush3.bf16.msra.mxu1 %v2141_v54  ;;  %2164 = vmatpush3.bf16.msra.mxu0 %v2161_v5 }
  0x2d   :  { %2146 = vmatprep.subr.bf16.mxu1 %v2145_v57  ;;  %2166 = vmatprep.subr.bf16.mxu0 %v2165_v8 }
  0x30   :  { %2148 = vmatpush3.bf16.msra.mxu1 %v2145_v57  ;;  %2168 = vmatpush3.bf16.msra.mxu0 %v2165_v8 }
  0x31   :  { %2170 = vmatprep.subr.bf16.mxu0 %v2169_v11 }
  0x34   :  { %2172 = vmatpush3.bf16.msra.mxu0 %v2169_v11 }
  0x35   :  { %2174 = vmatprep.subr.bf16.mxu0 %v2173_v14 }
  0x38   :  { %2176 = vmatpush3.bf16.msra.mxu0 %v2173_v14 }
  0xd9   :  { %v1911_v16 = vpop.f32.mrb[0].mxu0 }
  0xda   :  { %v248_v17 = vadd.f32 %v1911_v16, %v2518_v15  ;;  %v242_v18 = vpop.f32.mrb[1].mxu0 }
  0xdb   :  { %v243_v19 = vadd.f32 %v2518_v15, %v242_v18  ;;  %v2522_v22 = vpop.f32.mrb[0].mxu1 }
  0xdc   :  { %v402_v23 = vmax.f32 %v248_v17, 0.0  ;;  %v322_v26 = vpop.f32.mrb[1].mxu1  ;;  %v328_v14 = vadd.f32 %v2522_v22, %v2518_v15 }
  0xdd   :  { %v401_v20 = vmax.f32 %v243_v19, 0.0  ;;  %v1914_v21 = vpop.f32.mrb[2].mxu0  ;;  %v323_v7 = vadd.f32 %v2518_v15, %v322_v26 }
  0xde   :  { %v258_v24 = vadd.f32 %v1914_v21, %v2518_v15  ;;  %v252_v25 = vpop.f32.mrb[3].mxu0  ;;  %v418_v21 = vmax.f32 %v328_v14, 0.0  ;;  %v1191_v14 = vld [vmem:[%s3020_s1 + $0xb0] sm:$0xff] }
  0xdf   :  { %v253_v27 = vadd.f32 %v2518_v15, %v252_v25  ;;  %1989 = vmatprep.mubr.f32.mxu1 %v401_v20  ;;  %v2526_v30 = vpop.f32.mrb[2].mxu1  ;;  %v417_v17 = vmax.f32 %v323_v7, 0.0  ;;  %v1192_v7 = vld [vmem:[%s3020_s1 + $0xb8] sm:$0xff] }
  0xe0   :  { %1990 = vmatmul.mubr.f32.vlgmr.msra.gmra.mrb[16].mxu1 %v402_v23  ;;  %v404_v31 = vmax.f32 %v258_v24, 0.0  ;;  %v332_v34 = vpop.f32.mrb[3].mxu1  ;;  %v338_v23 = vadd.f32 %v2526_v30, %v2518_v15 }
  0xe1   :  { %v403_v28 = vmax.f32 %v253_v27, 0.0  ;;  %v1917_v29 = vpop.f32.mrb[4].mxu0  ;;  %v333_v18 = vadd.f32 %v2518_v15, %v332_v34 }
  0xe2   :  { %v268_v32 = vadd.f32 %v1917_v29, %v2518_v15  ;;  %v262_v33 = vpop.f32.mrb[5].mxu0  ;;  %v420_v26 = vmax.f32 %v338_v23, 0.0 }
  0xe3   :  { %v263_v35 = vadd.f32 %v2518_v15, %v262_v33  ;;  %1992 = vmatprep.mubr.f32.mxu1 %v403_v28  ;;  %v2530_v39 = vpop.f32.mrb[4].mxu1  ;;  %v419_v24 = vmax.f32 %v333_v18, 0.0  ;;  %v1197_v18 = vld [vmem:[%s3020_s1 + $0xe0] sm:$0xff] }
  0xe4   :  { %v406_v36 = vmax.f32 %v268_v32, 0.0  ;;  %1993 = vmatmul.mubr.f32.gmra.mrb[18].mxu1 %v404_v31  ;;  %v342_v42 = vpop.f32.mrb[5].mxu1  ;;  %v348_v22 = vadd.f32 %v2530_v39, %v2518_v15 }
  0xe5   :  { %v405_v37 = vmax.f32 %v263_v35, 0.0  ;;  %v1920_v38 = vpop.f32.mrb[6].mxu0  ;;  %v343_v25 = vadd.f32 %v2518_v15, %v342_v42 }
  0xe6   :  { %v278_v40 = vadd.f32 %v1920_v38, %v2518_v15  ;;  %v272_v41 = vpop.f32.mrb[7].mxu0  ;;  %v422_v29 = vmax.f32 %v348_v22, 0.0 }
  0xe7   :  { %v273_v43 = vadd.f32 %v2518_v15, %v272_v41  ;;  %1995 = vmatprep.mubr.f32.mxu1 %v405_v37  ;;  %v421_v27 = vmax.f32 %v343_v25, 0.0 }
  0xe8   :  { %v408_v44 = vmax.f32 %v278_v40, 0.0  ;;  %1996 = vmatmul.mubr.f32.gmra.mrb[20].mxu1 %v406_v36  ;;  %v1944_v47 = vpop.f32.mrb[6].mxu1 }
  0xe9   :  { %v407_v45 = vmax.f32 %v273_v43, 0.0  ;;  %v1923_v46 = vpop.f32.mrb[8].mxu0  ;;  %v352_v50 = vpop.f32.mrb[7].mxu1  ;;  %v358_v31 = vadd.f32 %v1944_v47, %v2518_v15 }
  0xea   :  { %v288_v48 = vadd.f32 %v1923_v46, %v2518_v15  ;;  %v282_v49 = vpop.f32.mrb[9].mxu0  ;;  %v353_v28 = vadd.f32 %v2518_v15, %v352_v50  ;;  %v1741_v50 = vld [vmem:[%s3023_s4 + $0xf8] sm:$0xff] }
  0xeb   :  { %v283_v51 = vadd.f32 %v2518_v15, %v282_v49  ;;  %1998 = vmatprep.mubr.f32.mxu1 %v407_v45  ;;  %v424_v33 = vmax.f32 %v358_v31, 0.0  ;;  %v1740_v49 = vld [vmem:[%s3023_s4 + $0xf0] sm:$0xff] }
  0xec   :  { %v410_v52 = vmax.f32 %v288_v48, 0.0  ;;  %1999 = vmatmul.mubr.f32.gmra.mrb[22].mxu1 %v408_v44  ;;  %v1947_v55 = vpop.f32.mrb[8].mxu1  ;;  %v423_v32 = vmax.f32 %v353_v28, 0.0 }
  0xed   :  { %v409_v53 = vmax.f32 %v283_v51, 0.0  ;;  %v1926_v54 = vpop.f32.mrb[10].mxu0  ;;  %v362_v58 = vpop.f32.mrb[9].mxu1  ;;  %v368_v34 = vadd.f32 %v1947_v55, %v2518_v15  ;;  %v2177_v51 = vpack.c.bf16 %v1741_v50, %v1740_v49  ;;  %v1173_v55 = vld [vmem:[%s3020_s1 + $0x20] sm:$0xff] }
  0xee   :  { %v298_v56 = vadd.f32 %v1926_v54, %v2518_v15  ;;  %v292_v57 = vpop.f32.mrb[11].mxu0  ;;  %v363_v30 = vadd.f32 %v2518_v15, %v362_v58  ;;  %v1172_v54 = vld [vmem:[%s3020_s1 + $0x18] sm:$0xff]  ;;  %v1174_v58 = vld [vmem:[%s3020_s1 + $0x28] sm:$0xff] }
  0xef   :  { %v293_v59 = vadd.f32 %v2518_v15, %v292_v57  ;;  %2001 = vmatprep.mubr.f32.mxu1 %v409_v53  ;;  %v426_v37 = vmax.f32 %v368_v34, 0.0  ;;  %2178 = vmatprep.subr.bf16.mxu0 %v2177_v51  ;;  %v1171_v53 = vld [vmem:[%s3020_s1 + $0x10] sm:$0xff]  ;;  %v1178_v57 = vld [vmem:[%s3020_s1 + $0x48] sm:$0xff] }
  0xf0   :  { %v412_v60 = vmax.f32 %v298_v56, 0.0  ;;  %2002 = vmatmul.mubr.f32.gmra.mrb[24].mxu1 %v410_v52  ;;  %v1950_v63 = vpop.f32.mrb[10].mxu1  ;;  %v425_v35 = vmax.f32 %v363_v30, 0.0  ;;  %2180 = vmatpush3.bf16.msra.mxu0 %v2177_v51  ;;  %v2237_v52 = vmov 0   ;;  %v1169_v56 = vld [vmem:[%s3020_s1] sm:$0xff] }
  0xf1   :  { %v411_v61 = vmax.f32 %v293_v59, 0.0  ;;  %v1929_v62 = vpop.f32.mrb[12].mxu0  ;;  %v372_v2 = vpop.f32.mrb[11].mxu1  ;;  %v378_v38 = vadd.f32 %v1950_v63, %v2518_v15  ;;  %2188 = vset.pattern.permute.xlu1 %v2237_v52  ;;  %2187 = vset.pattern.permute.xlu0 %v2237_v52  ;;  %v1180_v59 = vld [vmem:[%s3020_s1 + $0x58] sm:$0xff] }
  0xf2   :  { %v308_v0 = vadd.f32 %v1929_v62, %v2518_v15  ;;  %v302_v1 = vpop.f32.mrb[13].mxu0  ;;  %v373_v36 = vadd.f32 %v2518_v15, %v372_v2  ;;  %1204 = vperm.xlu0 %2187, %v1169_v56   ;;  %v1176_v62 = vld [vmem:[%s3020_s1 + $0x38] sm:$0xff]  ;;  %v1179_v2 = vld [vmem:[%s3020_s1 + $0x50] sm:$0xff] }
  0xf3   :  { %v303_v3 = vadd.f32 %v2518_v15, %v302_v1  ;;  %2004 = vmatprep.mubr.f32.mxu1 %v411_v61  ;;  %v428_v41 = vmax.f32 %v378_v38, 0.0  ;;  %v1182_v61 = vld [vmem:[%s3020_s1 + $0x68] sm:$0xff]  ;;  %v1184_v63 = vld [vmem:[%s3020_s1 + $0x78] sm:$0xff] }
  0xf4   :  { %v414_v4 = vmax.f32 %v308_v0, 0.0  ;;  %2005 = vmatmul.mubr.f32.gmra.mrb[26].mxu1 %v412_v60  ;;  %v1953_v8 = vpop.f32.mrb[12].mxu1  ;;  %v427_v39 = vmax.f32 %v373_v36, 0.0  ;;  %v1175_v60 = vld [vmem:[%s3020_s1 + $0x30] sm:$0xff]  ;;  %v1177_v0 = vld [vmem:[%s3020_s1 + $0x40] sm:$0xff]  ;;  %v1186_v1 = vld [vmem:[%s3020_s1 + $0x88] sm:$0xff] }
  0xf5   :  { %v413_v5 = vmax.f32 %v303_v3, 0.0  ;;  %v1932_v6 = vpop.f32.mrb[14].mxu0  ;;  %v382_v11 = vpop.f32.mrb[13].mxu1  ;;  %v388_v42 = vadd.f32 %v1953_v8, %v2518_v15  ;;  %v1188_v3 = vld [vmem:[%s3020_s1 + $0x98] sm:$0xff]  ;;  %v1185_v8 = vld [vmem:[%s3020_s1 + $0x80] sm:$0xff] }
  0xf6   :  { %v318_v9 = vadd.f32 %v1932_v6, %v2518_v15  ;;  %v312_v10 = vpop.f32.mrb[15].mxu0  ;;  %v383_v40 = vadd.f32 %v2518_v15, %v382_v11  ;;  %1231 = vperm.xlu0 %2187, %v1178_v57   ;;  %v1183_v6 = vld [vmem:[%s3020_s1 + $0x70] sm:$0xff]  ;;  %v1196_v11 = vld [vmem:[%s3020_s1 + $0xd8] sm:$0xff] }
  0xf7   :  { %v313_v12 = vadd.f32 %v2518_v15, %v312_v10  ;;  %2007 = vmatprep.mubr.f32.mxu1 %v413_v5  ;;  %v430_v45 = vmax.f32 %v388_v42, 0.0  ;;  %v1190_v5 = vld [vmem:[%s3020_s1 + $0xa8] sm:$0xff]  ;;  %v1187_v10 = vld [vmem:[%s3020_s1 + $0x90] sm:$0xff] }
  0xf8   :  { %v416_v13 = vmax.f32 %v318_v9, 0.0  ;;  %2008 = vmatmul.mubr.f32.gmra.mrb[28].mxu1 %v414_v4  ;;  %v1956_v19 = vpop.f32.mrb[14].mxu1  ;;  %v429_v43 = vmax.f32 %v383_v40, 0.0  ;;  %v1181_v4 = vld [vmem:[%s3020_s1 + $0x60] sm:$0xff]  ;;  %v1194_v9 = vld [vmem:[%s3020_s1 + $0xc8] sm:$0xff] }
  0xf9   :  { %v415_v16 = vmax.f32 %v313_v12, 0.0  ;;  %v392_v20 = vpop.f32.mrb[15].mxu1  ;;  %v398_v46 = vadd.f32 %v1956_v19, %v2518_v15  ;;  %v1189_v12 = vld [vmem:[%s3020_s1 + $0xa0] sm:$0xff] }
  0xfa   :  { %v393_v44 = vadd.f32 %v2518_v15, %v392_v20  ;;  %v1170_v15 = vld [vmem:[%s3020_s1 + $0x8] sm:$0xff]  ;;  %1237 = vperm.xlu0 %2187, %v1180_v59   ;;  %v2660_v19 = vld [vmem:[%s3024_s5] ss:$0 sm:$0xff] }
  0xfb   :  { %2010 = vmatprep.mubr.f32.mxu1 %v415_v16  ;;  %v432_v48 = vmax.f32 %v398_v46, 0.0  ;;  %1207 = vperm.xlu1 %2188, %v1170_v15   ;;  %v1193_v16 = vld [vmem:[%s3020_s1 + $0xc0] sm:$0xff] }
  0xfc   :  { %2011 = vmatmul.mubr.f32.gmra.mrb[30].mxu1 %v416_v13  ;;  %v431_v47 = vmax.f32 %v393_v44, 0.0  ;;  %v1198_v13 = vld [vmem:[%s3020_s1 + $0xe8] sm:$0xff] }
  0xfd   :  { %2013 = vmatprep.mubr.f32.mxu1 %v417_v17  ;;  %v1195_v17 = vld [vmem:[%s3020_s1 + $0xd0] sm:$0xff] }
  0xfe   :  { %1243 = vperm.xlu0 %2187, %v1182_v61  }
  0xff   :  { %1210 = vperm.xlu1 %2188, %v1171_v53  }
 0x100   :  { %2014 = vmatmul.mubr.f32.gmra.mrb[32].mxu1 %v418_v21 }
 0x101   :  { %2016 = vmatprep.mubr.f32.mxu1 %v419_v24 }
 0x102   :  { %1249 = vperm.xlu0 %2187, %v1184_v63  }
 0x103   :  { %1213 = vperm.xlu1 %2188, %v1172_v54  }
 0x104   :  { %2017 = vmatmul.mubr.f32.gmra.mrb[34].mxu1 %v420_v26 }
 0x105   :  { %2019 = vmatprep.mubr.f32.mxu1 %v421_v27 }
 0x106   :  { %1255 = vperm.xlu0 %2187, %v1186_v1  }
 0x107   :  { %1216 = vperm.xlu1 %2188, %v1173_v55  }
 0x108   :  { %2020 = vmatmul.mubr.f32.gmra.mrb[36].mxu1 %v422_v29 }
 0x109   :  { %2022 = vmatprep.mubr.f32.mxu1 %v423_v32 }
 0x10a   :  { %1261 = vperm.xlu0 %2187, %v1188_v3  }
 0x10b   :  { %1219 = vperm.xlu1 %2188, %v1174_v58  }
 0x10c   :  { %2023 = vmatmul.mubr.f32.gmra.mrb[38].mxu1 %v424_v33 }
 0x10d   :  { %2025 = vmatprep.mubr.f32.mxu1 %v425_v35 }
 0x10e   :  { %1267 = vperm.xlu0 %2187, %v1190_v5  }
 0x10f   :  { %1222 = vperm.xlu1 %2188, %v1175_v60  }
 0x110   :  { %2026 = vmatmul.mubr.f32.gmra.mrb[40].mxu1 %v426_v37 }
 0x111   :  { %2028 = vmatprep.mubr.f32.mxu1 %v427_v39 }
 0x112   :  { %1273 = vperm.xlu0 %2187, %v1192_v7  }
 0x113   :  { %1225 = vperm.xlu1 %2188, %v1176_v62  }
 0x114   :  { %2029 = vmatmul.mubr.f32.gmra.mrb[42].mxu1 %v428_v41 }
 0x115   :  { %2031 = vmatprep.mubr.f32.mxu1 %v429_v43 }
 0x116   :  { %1279 = vperm.xlu0 %2187, %v1194_v9  }
 0x117   :  { %1228 = vperm.xlu1 %2188, %v1177_v0  }
 0x118   :  { %2032 = vmatmul.mubr.f32.gmra.mrb[44].mxu1 %v430_v45 }
 0x119   :  { %2034 = vmatprep.mubr.f32.mxu1 %v431_v47 }
 0x11a   :  { %1285 = vperm.xlu0 %2187, %v1196_v11  }
 0x11b   :  { %1234 = vperm.xlu1 %2188, %v1179_v2  }
 0x11c   :  { %2035 = vmatmul.mubr.f32.gmra.mrb[46].mxu1 %v432_v48 }
 0x11e   :  { %1291 = vperm.xlu0 %2187, %v1198_v13  }
 0x11f   :  { %1240 = vperm.xlu1 %2188, %v1181_v4  }
 0x123   :  { %1246 = vperm.xlu1 %2188, %v1183_v6  }
 0x127   :  { %1252 = vperm.xlu1 %2188, %v1185_v8  }
 0x12b   :  { %1258 = vperm.xlu1 %2188, %v1187_v10  }
 0x12f   :  { %1264 = vperm.xlu1 %2188, %v1189_v12  }
 0x133   :  { %1270 = vperm.xlu1 %2188, %v1191_v14  }
 0x137   :  { %1276 = vperm.xlu1 %2188, %v1193_v16  }
 0x13b   :  { %1282 = vperm.xlu1 %2188, %v1195_v17  }
 0x13f   :  { %1288 = vperm.xlu1 %2188, %v1197_v18  }
 0x1b3   :  { %v1991_v20 = vpop.f32.mrb[16].mxu1 }
 0x1b4   :  { %v528_v21 = vadd.f32 %v1991_v20, %v2660_v19  ;;  %v522_v23 = vpop.f32.mrb[17].mxu1 }
 0x1b5   :  { %v523_v24 = vadd.f32 %v2660_v19, %v522_v23 }
 0x1b6   :  { %v682_v22 = vmax.f32 %v528_v21, 0.0 }
 0x1b7   :  { %v681_v25 = vmax.f32 %v523_v24, 0.0  ;;  %v1994_v26 = vpop.f32.mrb[18].mxu1 }
 0x1b8   :  { %v538_v27 = vadd.f32 %v1994_v26, %v2660_v19  ;;  %v532_v28 = vpop.f32.mrb[19].mxu1 }
 0x1b9   :  { %v533_v29 = vadd.f32 %v2660_v19, %v532_v28  ;;  %2069 = vmatprep.mubr.f32.mxu0 %v681_v25 }
 0x1ba   :  { %2070 = vmatmul.mubr.f32.vlgmr.msra.gmra.mrb[16].mxu0 %v682_v22  ;;  %v684_v30 = vmax.f32 %v538_v27, 0.0 }
 0x1bb   :  { %v683_v31 = vmax.f32 %v533_v29, 0.0  ;;  %v1997_v32 = vpop.f32.mrb[20].mxu1 }
 0x1bc   :  { %v548_v33 = vadd.f32 %v1997_v32, %v2660_v19  ;;  %v542_v34 = vpop.f32.mrb[21].mxu1 }
 0x1bd   :  { %v543_v35 = vadd.f32 %v2660_v19, %v542_v34  ;;  %2072 = vmatprep.mubr.f32.mxu0 %v683_v31 }
 0x1be   :  { %v686_v36 = vmax.f32 %v548_v33, 0.0  ;;  %2073 = vmatmul.mubr.f32.gmra.mrb[18].mxu0 %v684_v30 }
 0x1bf   :  { %v685_v37 = vmax.f32 %v543_v35, 0.0  ;;  %v2000_v38 = vpop.f32.mrb[22].mxu1 }
 0x1c0   :  { %v558_v39 = vadd.f32 %v2000_v38, %v2660_v19  ;;  %v552_v40 = vpop.f32.mrb[23].mxu1 }
 0x1c1   :  { %v553_v41 = vadd.f32 %v2660_v19, %v552_v40  ;;  %2075 = vmatprep.mubr.f32.mxu0 %v685_v37 }
 0x1c2   :  { %v688_v42 = vmax.f32 %v558_v39, 0.0  ;;  %2076 = vmatmul.mubr.f32.gmra.mrb[20].mxu0 %v686_v36 }
 0x1c3   :  { %v687_v43 = vmax.f32 %v553_v41, 0.0  ;;  %v2003_v44 = vpop.f32.mrb[24].mxu1 }
 0x1c4   :  { %v568_v45 = vadd.f32 %v2003_v44, %v2660_v19  ;;  %v562_v46 = vpop.f32.mrb[25].mxu1 }
 0x1c5   :  { %v563_v47 = vadd.f32 %v2660_v19, %v562_v46  ;;  %2078 = vmatprep.mubr.f32.mxu0 %v687_v43 }
 0x1c6   :  { %v690_v48 = vmax.f32 %v568_v45, 0.0  ;;  %2079 = vmatmul.mubr.f32.gmra.mrb[22].mxu0 %v688_v42  ;;  %v1208_v42 = vpop.permute.xlu1 %1207 }
 0x1c7   :  { %v689_v49 = vmax.f32 %v563_v47, 0.0  ;;  %v2006_v50 = vpop.f32.mrb[26].mxu1 }
 0x1c8   :  { %v578_v51 = vadd.f32 %v2006_v50, %v2660_v19  ;;  %v572_v52 = vpop.f32.mrb[27].mxu1 }
 0x1c9   :  { %v573_v15 = vadd.f32 %v2660_v19, %v572_v52  ;;  %2081 = vmatprep.mubr.f32.mxu0 %v689_v49  ;;  %v1201_v52 = vlaneseq }
 0x1ca   :  { %v692_v53 = vmax.f32 %v578_v51, 0.0  ;;  %2082 = vmatmul.mubr.f32.gmra.mrb[24].mxu0 %v690_v48  ;;  %v1211_v49 = vpop.permute.xlu1 %1210 }
 0x1cb   :  { %v691_v54 = vmax.f32 %v573_v15, 0.0  ;;  %v2009_v55 = vpop.f32.mrb[28].mxu1 }
 0x1cc   :  { %v588_v56 = vadd.f32 %v2009_v55, %v2660_v19  ;;  %v582_v57 = vpop.f32.mrb[29].mxu1 }
 0x1cd   :  { %v583_v58 = vadd.f32 %v2660_v19, %v582_v57  ;;  %2084 = vmatprep.mubr.f32.mxu0 %v691_v54  ;;  %v1205_v57 = vpop.permute.xlu0 %1204 }
 0x1ce   :  { %v694_v59 = vmax.f32 %v588_v56, 0.0  ;;  %2085 = vmatmul.mubr.f32.gmra.mrb[26].mxu0 %v692_v53  ;;  %v1214_v55 = vpop.permute.xlu1 %1213  ;;  %v2694_v56 = vand.u32 127, %v1201_v52 }
 0x1cf   :  { %v693_v60 = vmax.f32 %v583_v58, 0.0  ;;  %v2012_v61 = vpop.f32.mrb[30].mxu1 }
 0x1d0   :  { %v598_v62 = vadd.f32 %v2012_v61, %v2660_v19  ;;  %v592_v63 = vpop.f32.mrb[31].mxu1  ;;  %vm1300_vm2 = vcmp.eq.s32.totalorder %v1208_v42, %v2694_v56  ;;  %vm1299_vm3 = vcmp.eq.s32.totalorder %v1205_v57, %v2694_v56  ;;  %vm1301_vm4 = vcmp.eq.s32.totalorder %v1211_v49, %v2694_v56 }
 0x1d1   :  { %v593_v0 = vadd.f32 %v2660_v19, %v592_v63  ;;  %2087 = vmatprep.mubr.f32.mxu0 %v693_v60  ;;  %v2238_v60 = vmov 0.0   ;;  %vm1302_vm5 = vcmp.eq.s32.totalorder %v1214_v55, %v2694_v56 }
 0x1d2   :  { %v696_v1 = vmax.f32 %v598_v62, 0.0  ;;  %2088 = vmatmul.mubr.f32.gmra.mrb[28].mxu0 %v694_v59  ;;  %v1217_v58 = vpop.permute.xlu1 %1216  ;;  %v2703_v61 = vsel %vm1299_vm3, 1.0, %v2238_v60  ;;  %v2709_v63 = vsel %vm1301_vm4, 1.0, %v2238_v60 }
 0x1d3   :  { %v695_v2 = vmax.f32 %v593_v0, 0.0  ;;  %v2015_v3 = vpop.f32.mrb[32].mxu1  ;;  %vm1303_vm6 = vcmp.eq.s32.totalorder %v1217_v58, %v2694_v56 }
 0x1d4   :  { %v608_v4 = vadd.f32 %v2015_v3, %v2660_v19  ;;  %v602_v5 = vpop.f32.mrb[33].mxu1 }
 0x1d5   :  { %v603_v6 = vadd.f32 %v2660_v19, %v602_v5  ;;  %2090 = vmatprep.mubr.f32.mxu0 %v695_v2  ;;  %v2714_v2 = vsel %vm1302_vm5, 1.0, %v2238_v60 }
 0x1d6   :  { %v698_v7 = vmax.f32 %v608_v4, 0.0  ;;  %2091 = vmatmul.mubr.f32.gmra.mrb[30].mxu0 %v696_v1  ;;  %v1220_v59 = vpop.permute.xlu1 %1219  ;;  %v2719_v4 = vsel %vm1303_vm6, 1.0, %v2238_v60 }
 0x1d7   :  { %v697_v8 = vmax.f32 %v603_v6, 0.0  ;;  %v2018_v9 = vpop.f32.mrb[34].mxu1  ;;  %vm1304_vm7 = vcmp.eq.s32.totalorder %v1220_v59, %v2694_v56 }
 0x1d8   :  { %v618_v10 = vadd.f32 %v2018_v9, %v2660_v19  ;;  %v612_v11 = vpop.f32.mrb[35].mxu1 }
 0x1d9   :  { %v613_v12 = vadd.f32 %v2660_v19, %v612_v11  ;;  %2093 = vmatprep.mubr.f32.mxu0 %v697_v8  ;;  %v2724_v8 = vsel %vm1304_vm7, 1.0, %v2238_v60 }
 0x1da   :  { %v700_v13 = vmax.f32 %v618_v10, 0.0  ;;  %2094 = vmatmul.mubr.f32.gmra.mrb[32].mxu0 %v698_v7  ;;  %v1223_v1 = vpop.permute.xlu1 %1222  ;;  %v1232_v7 = vpop.permute.xlu0 %1231 }
 0x1db   :  { %v699_v14 = vmax.f32 %v613_v12, 0.0  ;;  %v2021_v16 = vpop.f32.mrb[36].mxu1  ;;  %vm1305_vm8 = vcmp.eq.s32.totalorder %v1223_v1, %v2694_v56  ;;  %vm1308_vm11 = vcmp.eq.s32.totalorder %v1232_v7, %v2694_v56 }
 0x1dc   :  { %v628_v17 = vadd.f32 %v2021_v16, %v2660_v19  ;;  %v622_v18 = vpop.f32.mrb[37].mxu1  ;;  %v2729_v10 = vsel %vm1305_vm8, 1.0, %v2238_v60 }
 0x1dd   :  { %v623_v20 = vadd.f32 %v2660_v19, %v622_v18  ;;  %2096 = vmatprep.mubr.f32.mxu0 %v699_v14 }
 0x1de   :  { %v702_v21 = vmax.f32 %v628_v17, 0.0  ;;  %2097 = vmatmul.mubr.f32.gmra.mrb[34].mxu0 %v700_v13  ;;  %v1226_v6 = vpop.permute.xlu1 %1225  ;;  %v1238_v16 = vpop.permute.xlu0 %1237 }
 0x1df   :  { %v701_v23 = vmax.f32 %v623_v20, 0.0  ;;  %v2024_v24 = vpop.f32.mrb[38].mxu1  ;;  %vm1306_vm9 = vcmp.eq.s32.totalorder %v1226_v6, %v2694_v56  ;;  %vm1310_vm13 = vcmp.eq.s32.totalorder %v1238_v16, %v2694_v56 }
 0x1e0   :  { %v638_v25 = vadd.f32 %v2024_v24, %v2660_v19  ;;  %v632_v26 = vpop.f32.mrb[39].mxu1  ;;  %v2733_v13 = vsel %vm1306_vm9, 1.0, %v2238_v60 }
 0x1e1   :  { %v633_v22 = vadd.f32 %v2660_v19, %v632_v26  ;;  %2099 = vmatprep.mubr.f32.mxu0 %v701_v23 }
 0x1e2   :  { %v704_v27 = vmax.f32 %v638_v25, 0.0  ;;  %2100 = vmatmul.mubr.f32.gmra.mrb[36].mxu0 %v702_v21  ;;  %v1229_v12 = vpop.permute.xlu1 %1228  ;;  %v2743_v21 = vsel %vm1308_vm11, 1.0, %v2238_v60 }
 0x1e3   :  { %v703_v28 = vmax.f32 %v633_v22, 0.0  ;;  %v2027_v29 = vpop.f32.mrb[40].mxu1  ;;  %vm1307_vm10 = vcmp.eq.s32.totalorder %v1229_v12, %v2694_v56  ;;  %v2753_v22 = vsel %vm1310_vm13, 1.0, %v2238_v60 }
 0x1e4   :  { %v648_v31 = vadd.f32 %v2027_v29, %v2660_v19  ;;  %v642_v32 = vpop.f32.mrb[41].mxu1  ;;  %v2739_v17 = vsel %vm1307_vm10, 1.0, %v2238_v60 }
 0x1e5   :  { %v643_v30 = vadd.f32 %v2660_v19, %v642_v32  ;;  %2102 = vmatprep.mubr.f32.mxu0 %v703_v28  ;;  %v1244_v28 = vpop.permute.xlu0 %1243 }
 0x1e6   :  { %v706_v33 = vmax.f32 %v648_v31, 0.0  ;;  %2103 = vmatmul.mubr.f32.gmra.mrb[38].mxu0 %v704_v27  ;;  %v1235_v20 = vpop.permute.xlu1 %1234  ;;  %vm1312_vm15 = vcmp.eq.s32.totalorder %v1244_v28, %v2694_v56 }
 0x1e7   :  { %v705_v34 = vmax.f32 %v643_v30, 0.0  ;;  %v2030_v35 = vpop.f32.mrb[42].mxu1  ;;  %vm1309_vm12 = vcmp.eq.s32.totalorder %v1235_v20, %v2694_v56  ;;  %v2763_v30 = vsel %vm1312_vm15, 1.0, %v2238_v60 }
 0x1e8   :  { %v658_v36 = vadd.f32 %v2030_v35, %v2660_v19  ;;  %v652_v37 = vpop.f32.mrb[43].mxu1  ;;  %v2749_v24 = vsel %vm1309_vm12, 1.0, %v2238_v60 }
 0x1e9   :  { %v653_v38 = vadd.f32 %v2660_v19, %v652_v37  ;;  %2105 = vmatprep.mubr.f32.mxu0 %v705_v34  ;;  %v1250_v34 = vpop.permute.xlu0 %1249 }
 0x1ea   :  { %v708_v39 = vmax.f32 %v658_v36, 0.0  ;;  %2106 = vmatmul.mubr.f32.gmra.mrb[40].mxu0 %v706_v33  ;;  %v1241_v26 = vpop.permute.xlu1 %1240  ;;  %vm1314_vm1 = vcmp.eq.s32.totalorder %v1250_v34, %v2694_v56 }
 0x1eb   :  { %v707_v40 = vmax.f32 %v653_v38, 0.0  ;;  %v2033_v41 = vpop.f32.mrb[44].mxu1  ;;  %vm1311_vm14 = vcmp.eq.s32.totalorder %v1241_v26, %v2694_v56  ;;  %v2773_v38 = vsel %vm1314_vm1, 1.0, %v2238_v60 }
 0x1ec   :  { %v668_v43 = vadd.f32 %v2033_v41, %v2660_v19  ;;  %v662_v44 = vpop.f32.mrb[45].mxu1  ;;  %v2758_v29 = vsel %vm1311_vm14, 1.0, %v2238_v60 }
 0x1ed   :  { %v663_v45 = vadd.f32 %v2660_v19, %v662_v44  ;;  %2108 = vmatprep.mubr.f32.mxu0 %v707_v40  ;;  %v1256_v40 = vpop.permute.xlu0 %1255 }
 0x1ee   :  { %v710_v46 = vmax.f32 %v668_v43, 0.0  ;;  %2109 = vmatmul.mubr.f32.gmra.mrb[42].mxu0 %v708_v39  ;;  %v1247_v32 = vpop.permute.xlu1 %1246  ;;  %vm1316_vm3 = vcmp.eq.s32.totalorder %v1256_v40, %v2694_v56 }
 0x1ef   :  { %v709_v47 = vmax.f32 %v663_v45, 0.0  ;;  %v2036_v48 = vpop.f32.mrb[46].mxu1  ;;  %vm1313_vm0 = vcmp.eq.s32.totalorder %v1247_v32, %v2694_v56  ;;  %v2783_v44 = vsel %vm1316_vm3, 1.0, %v2238_v60  ;;  %v2848_v32 = vld [vmem:[%s3025_s6] ss:$0 sm:$0xff] }
 0x1f0   :  { %v678_v50 = vadd.f32 %v2036_v48, %v2660_v19  ;;  %v672_v51 = vpop.f32.mrb[47].mxu1  ;;  %v2768_v35 = vsel %vm1313_vm0, 1.0, %v2238_v60 }
 0x1f1   :  { %2111 = vmatprep.mubr.f32.mxu0 %v709_v47  ;;  %v673_v15 = vadd.f32 %v2660_v19, %v672_v51  ;;  %v2700_v19 = vsel %vm1300_vm2, 1.0, %v2238_v60 }
 0x1f2   :  { %v712_v53 = vmax.f32 %v678_v50, 0.0  ;;  %2112 = vmatmul.mubr.f32.gmra.mrb[44].mxu0 %v710_v46  ;;  %v1625_v62 = vadd.f32 %v2700_v19, %v2703_v61  ;;  %v1253_v37 = vpop.permute.xlu1 %1252  ;;  %v1262_v46 = vpop.permute.xlu0 %1261 }
 0x1f3   :  { %v711_v54 = vmax.f32 %v673_v15, 0.0  ;;  %vm1315_vm2 = vcmp.eq.s32.totalorder %v1253_v37, %v2694_v56  ;;  %vm1318_vm5 = vcmp.eq.s32.totalorder %v1262_v46, %v2694_v56 }
 0x1f4   :  { %v1626_v0 = vadd.f32 %v2709_v63, %v1625_v62  ;;  %v2778_v41 = vsel %vm1315_vm2, 1.0, %v2238_v60  ;;  %v2793_v50 = vsel %vm1318_vm5, 1.0, %v2238_v60 }
 0x1f5   :  { %2114 = vmatprep.mubr.f32.mxu0 %v711_v54 }
 0x1f6   :  { %2115 = vmatmul.mubr.f32.gmra.mrb[46].mxu0 %v712_v53  ;;  %v1627_v3 = vadd.f32 %v2714_v2, %v1626_v0  ;;  %v1259_v43 = vpop.permute.xlu1 %1258  ;;  %v1268_v52 = vpop.permute.xlu0 %1267 }
 0x1f7   :  { %vm1317_vm4 = vcmp.eq.s32.totalorder %v1259_v43, %v2694_v56  ;;  %vm1320_vm7 = vcmp.eq.s32.totalorder %v1268_v52, %v2694_v56 }
 0x1f8   :  { %v1628_v5 = vadd.f32 %v2719_v4, %v1627_v3  ;;  %v2788_v47 = vsel %vm1317_vm4, 1.0, %v2238_v60  ;;  %v2803_v55 = vsel %vm1320_vm7, 1.0, %v2238_v60 }
 0x1fa   :  { %v1629_v9 = vadd.f32 %v2724_v8, %v1628_v5  ;;  %v1265_v49 = vpop.permute.xlu1 %1264  ;;  %v1274_v58 = vpop.permute.xlu0 %1273 }
 0x1fb   :  { %vm1319_vm6 = vcmp.eq.s32.totalorder %v1265_v49, %v2694_v56  ;;  %vm1322_vm9 = vcmp.eq.s32.totalorder %v1274_v58, %v2694_v56 }
 0x1fc   :  { %v1630_v11 = vadd.f32 %v2729_v10, %v1629_v9  ;;  %v2798_v15 = vsel %vm1319_vm6, 1.0, %v2238_v60  ;;  %v2813_v1 = vsel %vm1322_vm9, 1.0, %v2238_v60 }
 0x1fe   :  { %v1631_v14 = vadd.f32 %v2733_v13, %v1630_v11  ;;  %v1271_v54 = vpop.permute.xlu1 %1270  ;;  %v1280_v5 = vpop.permute.xlu0 %1279 }
 0x1ff   :  { %vm1321_vm8 = vcmp.eq.s32.totalorder %v1271_v54, %v2694_v56  ;;  %vm1324_vm11 = vcmp.eq.s32.totalorder %v1280_v5, %v2694_v56 }
 0x200   :  { %v1632_v18 = vadd.f32 %v2739_v17, %v1631_v14  ;;  %v2808_v59 = vsel %vm1321_vm8, 1.0, %v2238_v60  ;;  %v2823_v11 = vsel %vm1324_vm11, 1.0, %v2238_v60 }
 0x202   :  { %v1633_v23 = vadd.f32 %v2743_v21, %v1632_v18  ;;  %v1277_v0 = vpop.permute.xlu1 %1276  ;;  %v1286_v14 = vpop.permute.xlu0 %1285 }
 0x203   :  { %vm1323_vm10 = vcmp.eq.s32.totalorder %v1277_v0, %v2694_v56  ;;  %vm1326_vm13 = vcmp.eq.s32.totalorder %v1286_v14, %v2694_v56 }
 0x204   :  { %v1634_v25 = vadd.f32 %v2749_v24, %v1633_v23  ;;  %v2818_v6 = vsel %vm1323_vm10, 1.0, %v2238_v60  ;;  %v2833_v20 = vsel %vm1326_vm13, 1.0, %v2238_v60 }
 0x206   :  { %v1635_v27 = vadd.f32 %v2753_v22, %v1634_v25  ;;  %v1283_v9 = vpop.permute.xlu1 %1282  ;;  %v2841_v25 = vld [vmem:[%s3024_s5 + $0x1] ss:$0 sm:$0xff] }
 0x207   :  { %vm1325_vm12 = vcmp.eq.s32.totalorder %v1283_v9, %v2694_v56 }
 0x208   :  { %v1636_v31 = vadd.f32 %v2758_v29, %v1635_v27  ;;  %v2828_v16 = vsel %vm1325_vm12, 1.0, %v2238_v60 }
 0x20a   :  { %v1637_v33 = vadd.f32 %v2763_v30, %v1636_v31 }
 0x20c   :  { %v1638_v36 = vadd.f32 %v2768_v35, %v1637_v33 }
 0x20e   :  { %v1639_v39 = vadd.f32 %v2773_v38, %v1638_v36 }
 0x210   :  { %v1640_v42 = vadd.f32 %v2778_v41, %v1639_v39 }
 0x212   :  { %v1641_v45 = vadd.f32 %v2783_v44, %v1640_v42 }
 0x214   :  { %v1642_v48 = vadd.f32 %v2788_v47, %v1641_v45 }
 0x216   :  { %v1643_v51 = vadd.f32 %v2793_v50, %v1642_v48 }
 0x218   :  { %v1644_v53 = vadd.f32 %v2798_v15, %v1643_v51 }
 0x21a   :  { %v1645_v57 = vadd.f32 %v2803_v55, %v1644_v53 }
 0x21c   :  { %v1646_v62 = vadd.f32 %v2808_v59, %v1645_v57 }
 0x21e   :  { %v1647_v3 = vadd.f32 %v2813_v1, %v1646_v62 }
 0x220   :  { %v1648_v7 = vadd.f32 %v2818_v6, %v1647_v3 }
 0x222   :  { %v1649_v12 = vadd.f32 %v2823_v11, %v1648_v7 }
 0x224   :  { %v1650_v18 = vadd.f32 %v2828_v16, %v1649_v12 }
 0x226   :  { %v2836_v23 = vadd.f32 %v2833_v20, %v1650_v18 }
 0x28d   :  { %v2071_v26 = vpop.f32.mrb[16].mxu0 }
 0x28e   :  { %v810_v27 = vadd.f32 %v2071_v26, %v2841_v25  ;;  %v804_v28 = vpop.f32.mrb[17].mxu0 }
 0x28f   :  { %v805_v31 = vadd.f32 %v2841_v25, %v804_v28 }
 0x290   :  { %v964_v33 = vmax.f32 %v810_v27, 0.0 }
 0x291   :  { %v2074_v34 = vpop.f32.mrb[18].mxu0  ;;  %v963_v36 = vmax.f32 %v805_v31, 0.0 }
 0x292   :  { %v820_v37 = vadd.f32 %v2074_v34, %v2841_v25  ;;  %v814_v39 = vpop.f32.mrb[19].mxu0  ;;  %v1003_v40 = vmul.f32 %v2848_v32, %v964_v33 }
 0x293   :  { %v815_v42 = vadd.f32 %v2841_v25, %v814_v39  ;;  %v1002_v52 = vmul.f32 %v2848_v32, %v963_v36 }
 0x294   :  { %v966_v43 = vmax.f32 %v820_v37, 0.0  ;;  %1036 = vadd.xlane.f32.xlu0 %v1003_v40 }
 0x295   :  { %v2077_v45 = vpop.f32.mrb[20].mxu0  ;;  %v965_v46 = vmax.f32 %v815_v42, 0.0 }
 0x296   :  { %v830_v48 = vadd.f32 %v2077_v45, %v2841_v25  ;;  %v824_v49 = vpop.f32.mrb[21].mxu0  ;;  %v1005_v51 = vmul.f32 %v2848_v32, %v966_v43 }
 0x297   :  { %v825_v53 = vadd.f32 %v2841_v25, %v824_v49  ;;  %v1004_v3 = vmul.f32 %v2848_v32, %v965_v46 }
 0x298   :  { %1040 = vadd.xlane.f32.xlu1 %v1005_v51  ;;  %1034 = vadd.xlane.f32.xlu0 %v1002_v52  ;;  %v968_v58 = vmax.f32 %v830_v48, 0.0 }
 0x299   :  { %v967_v54 = vmax.f32 %v825_v53, 0.0  ;;  %v2080_v57 = vpop.f32.mrb[22].mxu0 }
 0x29a   :  { %v840_v62 = vadd.f32 %v2080_v57, %v2841_v25  ;;  %v834_v0 = vpop.f32.mrb[23].mxu0  ;;  %v1007_v27 = vmul.f32 %v2848_v32, %v968_v58 }
 0x29b   :  { %v835_v5 = vadd.f32 %v2841_v25, %v834_v0  ;;  %v1006_v7 = vmul.f32 %v2848_v32, %v967_v54 }
 0x29c   :  { %1038 = vadd.xlane.f32.xlu1 %v1004_v3  ;;  %v970_v14 = vmax.f32 %v840_v62, 0.0 }
 0x29d   :  { %v969_v9 = vmax.f32 %v835_v5, 0.0  ;;  %v2083_v12 = vpop.f32.mrb[24].mxu0  ;;  %1042 = vadd.xlane.f32.xlu0 %v1006_v7 }
 0x29e   :  { %v850_v18 = vadd.f32 %v2083_v12, %v2841_v25  ;;  %v844_v26 = vpop.f32.mrb[25].mxu0  ;;  %v1009_v40 = vmul.f32 %v2848_v32, %v970_v14 }
 0x29f   :  { %v845_v28 = vadd.f32 %v2841_v25, %v844_v26  ;;  %v1008_v31 = vmul.f32 %v2848_v32, %v969_v9 }
 0x2a0   :  { %1044 = vadd.xlane.f32.xlu1 %v1007_v27  ;;  %v972_v36 = vmax.f32 %v850_v18, 0.0 }
 0x2a1   :  { %v971_v33 = vmax.f32 %v845_v28, 0.0  ;;  %v2086_v34 = vpop.f32.mrb[26].mxu0  ;;  %1046 = vadd.xlane.f32.xlu0 %v1008_v31 }
 0x2a2   :  { %v860_v37 = vadd.f32 %v2086_v34, %v2841_v25  ;;  %v854_v39 = vpop.f32.mrb[27].mxu0  ;;  %v1011_v52 = vmul.f32 %v2848_v32, %v972_v36 }
 0x2a3   :  { %v855_v42 = vadd.f32 %v2841_v25, %v854_v39  ;;  %v1010_v43 = vmul.f32 %v2848_v32, %v971_v33 }
 0x2a4   :  { %1048 = vadd.xlane.f32.xlu1 %v1009_v40  ;;  %v974_v48 = vmax.f32 %v860_v37, 0.0 }
 0x2a5   :  { %v973_v45 = vmax.f32 %v855_v42, 0.0  ;;  %v2089_v46 = vpop.f32.mrb[28].mxu0  ;;  %1050 = vadd.xlane.f32.xlu0 %v1010_v43 }
 0x2a6   :  { %v870_v49 = vadd.f32 %v2089_v46, %v2841_v25  ;;  %v864_v51 = vpop.f32.mrb[29].mxu0  ;;  %v1013_v5 = vmul.f32 %v2848_v32, %v974_v48 }
 0x2a7   :  { %v865_v53 = vadd.f32 %v2841_v25, %v864_v51  ;;  %v1012_v54 = vmul.f32 %v2848_v32, %v973_v45 }
 0x2a8   :  { %1052 = vadd.xlane.f32.xlu1 %v1011_v52  ;;  %v976_v62 = vmax.f32 %v870_v49, 0.0 }
 0x2a9   :  { %v975_v57 = vmax.f32 %v865_v53, 0.0  ;;  %v2092_v58 = vpop.f32.mrb[30].mxu0  ;;  %1054 = vadd.xlane.f32.xlu0 %v1012_v54 }
 0x2aa   :  { %v880_v0 = vadd.f32 %v2092_v58, %v2841_v25  ;;  %v874_v3 = vpop.f32.mrb[31].mxu0  ;;  %v1015_v28 = vmul.f32 %v2848_v32, %v976_v62 }
 0x2ab   :  { %v875_v7 = vadd.f32 %v2841_v25, %v874_v3  ;;  %v1014_v9 = vmul.f32 %v2848_v32, %v975_v57 }
 0x2ac   :  { %1056 = vadd.xlane.f32.xlu1 %v1013_v5  ;;  %v978_v18 = vmax.f32 %v880_v0, 0.0 }
 0x2ad   :  { %v977_v12 = vmax.f32 %v875_v7, 0.0  ;;  %v2095_v14 = vpop.f32.mrb[32].mxu0  ;;  %1058 = vadd.xlane.f32.xlu0 %v1014_v9 }
 0x2ae   :  { %v890_v26 = vadd.f32 %v2095_v14, %v2841_v25  ;;  %v884_v27 = vpop.f32.mrb[33].mxu0  ;;  %v1017_v42 = vmul.f32 %v2848_v32, %v978_v18 }
 0x2af   :  { %v885_v31 = vadd.f32 %v2841_v25, %v884_v27  ;;  %v1016_v33 = vmul.f32 %v2848_v32, %v977_v12 }
 0x2b0   :  { %1060 = vadd.xlane.f32.xlu1 %v1015_v28  ;;  %v980_v37 = vmax.f32 %v890_v26, 0.0 }
 0x2b1   :  { %v979_v34 = vmax.f32 %v885_v31, 0.0  ;;  %v2098_v36 = vpop.f32.mrb[34].mxu0  ;;  %1062 = vadd.xlane.f32.xlu0 %v1016_v33 }
 0x2b2   :  { %v900_v39 = vadd.f32 %v2098_v36, %v2841_v25  ;;  %v894_v40 = vpop.f32.mrb[35].mxu0  ;;  %v1019_v53 = vmul.f32 %v2848_v32, %v980_v37 }
 0x2b3   :  { %v895_v43 = vadd.f32 %v2841_v25, %v894_v40  ;;  %v1018_v45 = vmul.f32 %v2848_v32, %v979_v34 }
 0x2b4   :  { %1064 = vadd.xlane.f32.xlu1 %v1017_v42  ;;  %v982_v49 = vmax.f32 %v900_v39, 0.0 }
 0x2b5   :  { %v981_v46 = vmax.f32 %v895_v43, 0.0  ;;  %v2101_v48 = vpop.f32.mrb[36].mxu0  ;;  %1066 = vadd.xlane.f32.xlu0 %v1018_v45 }
 0x2b6   :  { %v910_v51 = vadd.f32 %v2101_v48, %v2841_v25  ;;  %v904_v52 = vpop.f32.mrb[37].mxu0  ;;  %v1021_v7 = vmul.f32 %v2848_v32, %v982_v49 }
 0x2b7   :  { %v905_v54 = vadd.f32 %v2841_v25, %v904_v52  ;;  %v1020_v57 = vmul.f32 %v2848_v32, %v981_v46 }
 0x2b8   :  { %1068 = vadd.xlane.f32.xlu1 %v1019_v53  ;;  %v984_v0 = vmax.f32 %v910_v51, 0.0 }
 0x2b9   :  { %v983_v58 = vmax.f32 %v905_v54, 0.0  ;;  %v2104_v62 = vpop.f32.mrb[38].mxu0  ;;  %1070 = vadd.xlane.f32.xlu0 %v1020_v57 }
 0x2ba   :  { %v920_v3 = vadd.f32 %v2104_v62, %v2841_v25  ;;  %v914_v5 = vpop.f32.mrb[39].mxu0  ;;  %v1023_v31 = vmul.f32 %v2848_v32, %v984_v0 }
 0x2bb   :  { %v915_v9 = vadd.f32 %v2841_v25, %v914_v5  ;;  %v1022_v12 = vmul.f32 %v2848_v32, %v983_v58 }
 0x2bc   :  { %1072 = vadd.xlane.f32.xlu1 %v1021_v7  ;;  %v986_v26 = vmax.f32 %v920_v3, 0.0 }
 0x2bd   :  { %v985_v14 = vmax.f32 %v915_v9, 0.0  ;;  %v2107_v18 = vpop.f32.mrb[40].mxu0  ;;  %1074 = vadd.xlane.f32.xlu0 %v1022_v12 }
 0x2be   :  { %v930_v27 = vadd.f32 %v2107_v18, %v2841_v25  ;;  %v924_v28 = vpop.f32.mrb[41].mxu0  ;;  %v1025_v43 = vmul.f32 %v2848_v32, %v986_v26 }
 0x2bf   :  { %v925_v33 = vadd.f32 %v2841_v25, %v924_v28  ;;  %v1024_v34 = vmul.f32 %v2848_v32, %v985_v14 }
 0x2c0   :  { %1076 = vadd.xlane.f32.xlu1 %v1023_v31  ;;  %v988_v39 = vmax.f32 %v930_v27, 0.0 }
 0x2c1   :  { %v987_v36 = vmax.f32 %v925_v33, 0.0  ;;  %v2110_v37 = vpop.f32.mrb[42].mxu0  ;;  %1078 = vadd.xlane.f32.xlu0 %v1024_v34  ;;  %v2912_v33 = vpop.permute.xlu0 %1291  ;;  %v2914_v34 = vld [vmem:[#allocation2] ss:$0 sm:$0xff] }
 0x2c2   :  { %v940_v40 = vadd.f32 %v2110_v37, %v2841_v25  ;;  %v934_v42 = vpop.f32.mrb[43].mxu0  ;;  %v1027_v54 = vmul.f32 %v2848_v32, %v988_v39  ;;  %vm1328_vm15 = vcmp.eq.s32.totalorder %v2912_v33, %v2694_v56 }
 0x2c3   :  { %v935_v45 = vadd.f32 %v2841_v25, %v934_v42  ;;  %v1026_v46 = vmul.f32 %v2848_v32, %v987_v36 }
 0x2c4   :  { %1080 = vadd.xlane.f32.xlu1 %v1025_v43  ;;  %v990_v51 = vmax.f32 %v940_v40, 0.0 }
 0x2c5   :  { %v989_v48 = vmax.f32 %v935_v45, 0.0  ;;  %v2113_v49 = vpop.f32.mrb[44].mxu0  ;;  %1082 = vadd.xlane.f32.xlu0 %v1026_v46 }
 0x2c6   :  { %v950_v52 = vadd.f32 %v2113_v49, %v2841_v25  ;;  %v944_v53 = vpop.f32.mrb[45].mxu0  ;;  %v1029_v9 = vmul.f32 %v2848_v32, %v990_v51 }
 0x2c7   :  { %v945_v57 = vadd.f32 %v2841_v25, %v944_v53  ;;  %v1028_v58 = vmul.f32 %v2848_v32, %v989_v48 }
 0x2c8   :  { %1084 = vadd.xlane.f32.xlu1 %v1027_v54  ;;  %v992_v3 = vmax.f32 %v950_v52, 0.0 }
 0x2c9   :  { %v991_v62 = vmax.f32 %v945_v57, 0.0  ;;  %1086 = vadd.xlane.f32.xlu0 %v1028_v58  ;;  %v2116_v0 = vpop.f32.mrb[46].mxu0 }
 0x2ca   :  { %v960_v5 = vadd.f32 %v2116_v0, %v2841_v25  ;;  %v954_v7 = vpop.f32.mrb[47].mxu0  ;;  %v1031_v27 = vmul.f32 %v2848_v32, %v992_v3 }
 0x2cb   :  { %v955_v12 = vadd.f32 %v2841_v25, %v954_v7  ;;  %v1030_v14 = vmul.f32 %v2848_v32, %v991_v62  ;;  %v2916_v25 = vpop.permute.xlu1 %1288 }
 0x2cc   :  { %v994_v18 = vmax.f32 %v960_v5, 0.0  ;;  %1088 = vadd.xlane.f32.xlu1 %v1029_v9  ;;  %vm1327_vm14 = vcmp.eq.s32.totalorder %v2916_v25, %v2694_v56 }
 0x2cd   :  { %v993_v26 = vmax.f32 %v955_v12, 0.0  ;;  %1090 = vadd.xlane.f32.xlu0 %v1030_v14 }
 0x2ce   :  { %v1033_v28 = vmul.f32 %v2848_v32, %v994_v18 }
 0x2cf   :  { %v1032_v31 = vmul.f32 %v2848_v32, %v993_v26 }
 0x2d0   :  { %1092 = vadd.xlane.f32.xlu1 %v1031_v27 }
 0x2d1   :  { %1094 = vadd.xlane.f32.xlu0 %v1032_v31 }
 0x2d4   :  { %1096 = vadd.xlane.f32.xlu1 %v1033_v28 }
 0x321   :  { %v1037_v36 = vpop.xlane.xlu0 %1036 }
 0x322   :  { %v1106_v37 = vadd.f32 %v2914_v34, %v1037_v36 }
 0x324   :  { %v1138_v39 = vmax.f32 %v1106_v37, 0.0 }
 0x325   :  { %v1041_v40 = vpop.xlane.xlu1 %1040  ;;  %v1035_v42 = vpop.xlane.xlu0 %1034 }
 0x326   :  { %v1108_v43 = vadd.f32 %v2914_v34, %v1041_v40  ;;  %v1105_v45 = vadd.f32 %v2914_v34, %v1035_v42  ;;  %1402 = vperm.xlu1 %2188, %v1138_v39  }
 0x328   :  { %v1140_v32 = vmax.f32 %v1108_v43, 0.0  ;;  %v1137_v46 = vmax.f32 %v1105_v45, 0.0 }
 0x329   :  { %v1039_v48 = vpop.xlane.xlu1 %1038 }
 0x32a   :  { %v1107_v49 = vadd.f32 %v2914_v34, %v1039_v48  ;;  %1412 = vperm.xlu1 %2188, %v1140_v32   ;;  %1397 = vperm.xlu0 %2187, %v1137_v46   ;;  %v1043_v51 = vpop.xlane.xlu0 %1042 }
 0x32b   :  { %v1109_v53 = vadd.f32 %v2914_v34, %v1043_v51 }
 0x32c   :  { %v1139_v52 = vmax.f32 %v1107_v49, 0.0 }
 0x32d   :  { %v1045_v54 = vpop.xlane.xlu1 %1044  ;;  %v1141_v62 = vmax.f32 %v1109_v53, 0.0 }
 0x32e   :  { %v1110_v57 = vadd.f32 %v2914_v34, %v1045_v54  ;;  %1407 = vperm.xlu0 %2187, %v1139_v52   ;;  %v1047_v58 = vpop.xlane.xlu0 %1046 }
 0x32f   :  { %v1111_v3 = vadd.f32 %v2914_v34, %v1047_v58 }
 0x330   :  { %v1142_v0 = vmax.f32 %v1110_v57, 0.0 }
 0x331   :  { %v1049_v5 = vpop.xlane.xlu1 %1048  ;;  %v1143_v12 = vmax.f32 %v1111_v3, 0.0 }
 0x332   :  { %v1112_v7 = vadd.f32 %v2914_v34, %v1049_v5  ;;  %1422 = vperm.xlu1 %2188, %v1142_v0   ;;  %1417 = vperm.xlu0 %2187, %v1141_v62   ;;  %v1051_v9 = vpop.xlane.xlu0 %1050 }
 0x333   :  { %v1113_v18 = vadd.f32 %v2914_v34, %v1051_v9 }
 0x334   :  { %v1144_v14 = vmax.f32 %v1112_v7, 0.0 }
 0x335   :  { %v1053_v26 = vpop.xlane.xlu1 %1052  ;;  %v1145_v31 = vmax.f32 %v1113_v18, 0.0 }
 0x336   :  { %v1114_v27 = vadd.f32 %v2914_v34, %v1053_v26  ;;  %1432 = vperm.xlu1 %2188, %v1144_v14   ;;  %1427 = vperm.xlu0 %2187, %v1143_v12   ;;  %v1055_v28 = vpop.xlane.xlu0 %1054 }
 0x337   :  { %v1115_v37 = vadd.f32 %v2914_v34, %v1055_v28 }
 0x338   :  { %v1146_v36 = vmax.f32 %v1114_v27, 0.0 }
 0x339   :  { %v1057_v39 = vpop.xlane.xlu1 %1056  ;;  %v1147_v43 = vmax.f32 %v1115_v37, 0.0 }
 0x33a   :  { %v1116_v40 = vadd.f32 %v2914_v34, %v1057_v39  ;;  %1442 = vperm.xlu1 %2188, %v1146_v36   ;;  %1437 = vperm.xlu0 %2187, %v1145_v31   ;;  %v1059_v42 = vpop.xlane.xlu0 %1058 }
 0x33b   :  { %v1117_v32 = vadd.f32 %v2914_v34, %v1059_v42 }
 0x33c   :  { %v1148_v45 = vmax.f32 %v1116_v40, 0.0 }
 0x33d   :  { %v1061_v46 = vpop.xlane.xlu1 %1060  ;;  %v1149_v51 = vmax.f32 %v1117_v32, 0.0 }
 0x33e   :  { %v1118_v48 = vadd.f32 %v2914_v34, %v1061_v46  ;;  %1452 = vperm.xlu1 %2188, %v1148_v45   ;;  %1447 = vperm.xlu0 %2187, %v1147_v43   ;;  %v1063_v49 = vpop.xlane.xlu0 %1062 }
 0x33f   :  { %v1119_v53 = vadd.f32 %v2914_v34, %v1063_v49 }
 0x340   :  { %v1150_v52 = vmax.f32 %v1118_v48, 0.0 }
 0x341   :  { %v1065_v54 = vpop.xlane.xlu1 %1064  ;;  %v1151_v62 = vmax.f32 %v1119_v53, 0.0 }
 0x342   :  { %v1120_v57 = vadd.f32 %v2914_v34, %v1065_v54  ;;  %1462 = vperm.xlu1 %2188, %v1150_v52   ;;  %1457 = vperm.xlu0 %2187, %v1149_v51   ;;  %v1067_v58 = vpop.xlane.xlu0 %1066 }
 0x343   :  { %v1121_v3 = vadd.f32 %v2914_v34, %v1067_v58 }
 0x344   :  { %v1152_v0 = vmax.f32 %v1120_v57, 0.0 }
 0x345   :  { %v1069_v5 = vpop.xlane.xlu1 %1068  ;;  %v1153_v12 = vmax.f32 %v1121_v3, 0.0 }
 0x346   :  { %v1122_v7 = vadd.f32 %v2914_v34, %v1069_v5  ;;  %1472 = vperm.xlu1 %2188, %v1152_v0   ;;  %1467 = vperm.xlu0 %2187, %v1151_v62   ;;  %v1071_v9 = vpop.xlane.xlu0 %1070 }
 0x347   :  { %v1123_v18 = vadd.f32 %v2914_v34, %v1071_v9 }
 0x348   :  { %v1154_v14 = vmax.f32 %v1122_v7, 0.0 }
 0x349   :  { %v1073_v26 = vpop.xlane.xlu1 %1072  ;;  %v1155_v31 = vmax.f32 %v1123_v18, 0.0 }
 0x34a   :  { %v1124_v27 = vadd.f32 %v2914_v34, %v1073_v26  ;;  %1482 = vperm.xlu1 %2188, %v1154_v14   ;;  %1477 = vperm.xlu0 %2187, %v1153_v12   ;;  %v1075_v28 = vpop.xlane.xlu0 %1074 }
 0x34b   :  { %v1125_v37 = vadd.f32 %v2914_v34, %v1075_v28 }
 0x34c   :  { %v1156_v36 = vmax.f32 %v1124_v27, 0.0  ;;  %v1199_v27 = vld [vmem:[%s3020_s1 + $0xf0] sm:$0xff] }
 0x34d   :  { %v1077_v39 = vpop.xlane.xlu1 %1076  ;;  %v1157_v43 = vmax.f32 %v1125_v37, 0.0 }
 0x34e   :  { %v1126_v40 = vadd.f32 %v2914_v34, %v1077_v39  ;;  %1492 = vperm.xlu1 %2188, %v1156_v36   ;;  %1487 = vperm.xlu0 %2187, %v1155_v31   ;;  %v1079_v42 = vpop.xlane.xlu0 %1078  ;;  %v1200_v39 = vld [vmem:[%s3020_s1 + $0xf8] sm:$0xff]  ;;  %s2239_s1 = smov [#allocation5]  }
 0x34f   :  { %v1127_v32 = vadd.f32 %v2914_v34, %v1079_v42  ;;  %s1679_s0 = sshll.u32 %s2239_s1, 4  ;;  %s1680_s0 = int_to_ptr.vmem [resolvable:$true] %s1679_s0 }
 0x350   :  { %v1158_v45 = vmax.f32 %v1126_v40, 0.0  ;;  %s2189_s2 = scalar_lea.vmem %s1680_s0, 16  ;;  %s2193_s18 = scalar_lea.vmem %s1680_s0, 32 }
 0x351   :  { %v1081_v46 = vpop.xlane.xlu1 %1080  ;;  %v1159_v51 = vmax.f32 %v1127_v32, 0.0  ;;  %p2190_p0 = scmp.ne.s32.totalorder %s1680_s0, %s2189_s2  ;;  %p2194_p1 = scmp.lt.s32.totalorder %s1680_s0, %s1680_s0 }
 0x352   :  { %v1128_v48 = vadd.f32 %v2914_v34, %v1081_v46  ;;  %1502 = vperm.xlu1 %2188, %v1158_v45   ;;  %1497 = vperm.xlu0 %2187, %v1157_v43   ;;  %v1083_v49 = vpop.xlane.xlu0 %1082  ;;  %p2195_p2 = scmp.lt.s32.totalorder %s2193_s18, %s2189_s2 }
 0x353   :  { %v1129_v53 = vadd.f32 %v2914_v34, %v1083_v49 }
 0x354   :  { %v1160_v52 = vmax.f32 %v1128_v48, 0.0  ;;  %p2196_p3 = por %p2195_p2, %p2194_p1 }
 0x355   :  { %v1085_v54 = vpop.xlane.xlu1 %1084  ;;  %v1161_v62 = vmax.f32 %v1129_v53, 0.0 }
 0x356   :  { %v1130_v57 = vadd.f32 %v2914_v34, %v1085_v54  ;;  %1512 = vperm.xlu1 %2188, %v1160_v52   ;;  %1507 = vperm.xlu0 %2187, %v1159_v51   ;;  %v1087_v58 = vpop.xlane.xlu0 %1086  ;;  %p2197_p4 = pnand %p2196_p3, %p2190_p0 }
 0x357   :  { %v1131_v3 = vadd.f32 %v2914_v34, %v1087_v58 }
 0x358   :  { %v1162_v0 = vmax.f32 %v1130_v57, 0.0 }
 0x359   :  { %v1089_v5 = vpop.xlane.xlu1 %1088  ;;  %v1163_v9 = vmax.f32 %v1131_v3, 0.0 }
 0x35a   :  { %v1132_v7 = vadd.f32 %v2914_v34, %v1089_v5  ;;  %1522 = vperm.xlu1 %2188, %v1162_v0   ;;  %1517 = vperm.xlu0 %2187, %v1161_v62   ;;  %v1091_v14 = vpop.xlane.xlu0 %1090 }
 0x35b   :  { %v1133_v28 = vadd.f32 %v2914_v34, %v1091_v14 }
 0x35c   :  { %v1164_v12 = vmax.f32 %v1132_v7, 0.0 }
 0x35d   :  { %v1093_v18 = vpop.xlane.xlu1 %1092  ;;  %v1165_v40 = vmax.f32 %v1133_v28, 0.0 }
 0x35e   :  { %v1134_v26 = vadd.f32 %v2914_v34, %v1093_v18  ;;  %1532 = vperm.xlu1 %2188, %v1164_v12   ;;  %1527 = vperm.xlu0 %2187, %v1163_v9   ;;  %v1095_v36 = vpop.xlane.xlu0 %1094 }
 0x35f   :  { %v1135_v42 = vadd.f32 %v2914_v34, %v1095_v36 }
 0x360   :  { %v1166_v31 = vmax.f32 %v1134_v26, 0.0 }
 0x361   :  { %v1097_v37 = vpop.xlane.xlu1 %1096  ;;  %v1167_v45 = vmax.f32 %v1135_v42, 0.0 }
 0x362   :  { %1542 = vperm.xlu1 %2188, %v1166_v31   ;;  %1294 = vperm.xlu0 %2187, %v1199_v27   ;;  %v1136_v43 = vadd.f32 %v2914_v34, %v1097_v37 }
 0x364   :  { %v1168_v32 = vmax.f32 %v1136_v43, 0.0 }
 0x366   :  { %1297 = vperm.xlu0 %2187, %v1200_v39   ;;  %1537 = vperm.xlu1 %2188, %v1165_v40  }
 0x36a   :  { %1552 = vperm.xlu0 %2187, %v1168_v32   ;;  %1547 = vperm.xlu1 %2188, %v1167_v45  }
 0x3a5   :  { %v1403_v46 = vpop.permute.xlu1 %1402 }
 0x3a6   :  { %v1556_v51 = vmul.f32 %v2700_v19, %v1403_v46 }
 0x3a9   :  { %v1398_v48 = vpop.permute.xlu0 %1397  ;;  %v1413_v52 = vpop.permute.xlu1 %1412 }
 0x3aa   :  { %v1555_v49 = vmul.f32 %v2703_v61, %v1398_v48  ;;  %v1558_v58 = vmul.f32 %v2714_v2, %v1413_v52 }
 0x3ac   :  { %v1587_v54 = vadd.f32 %v1556_v51, %v1555_v49 }
 0x3ad   :  { %v1408_v53 = vpop.permute.xlu0 %1407 }
 0x3ae   :  { %v1557_v57 = vmul.f32 %v2709_v63, %v1408_v53 }
 0x3b0   :  { %v1588_v34 = vadd.f32 %v1587_v54, %v1557_v57 }
 0x3b1   :  { %v1423_v62 = vpop.permute.xlu1 %1422  ;;  %v1418_v0 = vpop.permute.xlu0 %1417 }
 0x3b2   :  { %v1589_v3 = vadd.f32 %v1588_v34, %v1558_v58  ;;  %v1559_v5 = vmul.f32 %v2719_v4, %v1418_v0  ;;  %v1560_v7 = vmul.f32 %v2724_v8, %v1423_v62 }
 0x3b4   :  { %v1590_v9 = vadd.f32 %v1589_v3, %v1559_v5 }
 0x3b5   :  { %v1433_v12 = vpop.permute.xlu1 %1432  ;;  %v1428_v61 = vpop.permute.xlu0 %1427 }
 0x3b6   :  { %v1591_v14 = vadd.f32 %v1590_v9, %v1560_v7  ;;  %v1561_v19 = vmul.f32 %v2729_v10, %v1428_v61  ;;  %v1562_v18 = vmul.f32 %v2733_v13, %v1433_v12 }
 0x3b8   :  { %v1592_v26 = vadd.f32 %v1591_v14, %v1561_v19 }
 0x3b9   :  { %v1443_v63 = vpop.permute.xlu1 %1442  ;;  %v1438_v27 = vpop.permute.xlu0 %1437 }
 0x3ba   :  { %v1593_v2 = vadd.f32 %v1592_v26, %v1562_v18  ;;  %v1563_v28 = vmul.f32 %v2739_v17, %v1438_v27  ;;  %v1564_v31 = vmul.f32 %v2743_v21, %v1443_v63 }
 0x3bc   :  { %v1594_v36 = vadd.f32 %v1593_v2, %v1563_v28  ;;  %v1774_v28 = vsel %vm1327_vm14, 1.0, %v2238_v60 }
 0x3bd   :  { %v1453_v4 = vpop.permute.xlu1 %1452  ;;  %v1448_v37 = vpop.permute.xlu0 %1447  ;;  %v1652_v25 = vadd.f32 %v1774_v28, %v2836_v23 }
 0x3be   :  { %v1595_v8 = vadd.f32 %v1594_v36, %v1564_v31  ;;  %v1565_v39 = vmul.f32 %v2749_v24, %v1448_v37  ;;  %v1566_v40 = vmul.f32 %v2753_v22, %v1453_v4 }
 0x3c0   :  { %v1596_v42 = vadd.f32 %v1595_v8, %v1565_v39 }
 0x3c1   :  { %v1463_v10 = vpop.permute.xlu1 %1462  ;;  %v1458_v43 = vpop.permute.xlu0 %1457 }
 0x3c2   :  { %v1597_v13 = vadd.f32 %v1596_v42, %v1566_v40  ;;  %v1567_v45 = vmul.f32 %v2758_v29, %v1458_v43  ;;  %v1568_v32 = vmul.f32 %v2763_v30, %v1463_v10 }
 0x3c4   :  { %v1598_v46 = vadd.f32 %v1597_v13, %v1567_v45 }
 0x3c5   :  { %v1473_v17 = vpop.permute.xlu1 %1472  ;;  %v1468_v48 = vpop.permute.xlu0 %1467 }
 0x3c6   :  { %v1599_v21 = vadd.f32 %v1598_v46, %v1568_v32  ;;  %v1569_v49 = vmul.f32 %v2768_v35, %v1468_v48  ;;  %v1570_v51 = vmul.f32 %v2773_v38, %v1473_v17 }
 0x3c8   :  { %v1600_v52 = vadd.f32 %v1599_v21, %v1569_v49 }
 0x3c9   :  { %v1483_v24 = vpop.permute.xlu1 %1482  ;;  %v1478_v53 = vpop.permute.xlu0 %1477 }
 0x3ca   :  { %v1601_v22 = vadd.f32 %v1600_v52, %v1570_v51  ;;  %v1571_v54 = vmul.f32 %v2778_v41, %v1478_v53  ;;  %v1572_v57 = vmul.f32 %v2783_v44, %v1483_v24 }
 0x3cc   :  { %v1602_v58 = vadd.f32 %v1601_v22, %v1571_v54 }
 0x3cd   :  { %v1493_v29 = vpop.permute.xlu1 %1492  ;;  %v1488_v34 = vpop.permute.xlu0 %1487 }
 0x3ce   :  { %v1603_v30 = vadd.f32 %v1602_v58, %v1572_v57  ;;  %v1573_v62 = vmul.f32 %v2788_v47, %v1488_v34  ;;  %v1574_v0 = vmul.f32 %v2793_v50, %v1493_v29 }
 0x3d0   :  { %v1604_v3 = vadd.f32 %v1603_v30, %v1573_v62 }
 0x3d1   :  { %v1503_v35 = vpop.permute.xlu1 %1502  ;;  %v1498_v5 = vpop.permute.xlu0 %1497 }
 0x3d2   :  { %v1605_v38 = vadd.f32 %v1604_v3, %v1574_v0  ;;  %v1575_v7 = vmul.f32 %v2798_v15, %v1498_v5  ;;  %v1576_v9 = vmul.f32 %v2803_v55, %v1503_v35 }
 0x3d4   :  { %v1606_v12 = vadd.f32 %v1605_v38, %v1575_v7 }
 0x3d5   :  { %v1513_v41 = vpop.permute.xlu1 %1512  ;;  %v1508_v61 = vpop.permute.xlu0 %1507 }
 0x3d6   :  { %v1607_v44 = vadd.f32 %v1606_v12, %v1576_v9  ;;  %v1577_v14 = vmul.f32 %v2808_v59, %v1508_v61  ;;  %v1578_v19 = vmul.f32 %v2813_v1, %v1513_v41 }
 0x3d8   :  { %v1608_v18 = vadd.f32 %v1607_v44, %v1577_v14 }
 0x3d9   :  { %v1523_v47 = vpop.permute.xlu1 %1522  ;;  %v1518_v26 = vpop.permute.xlu0 %1517 }
 0x3da   :  { %v1609_v50 = vadd.f32 %v1608_v18, %v1578_v19  ;;  %v1579_v63 = vmul.f32 %v2818_v6, %v1518_v26  ;;  %v1580_v15 = vmul.f32 %v2823_v11, %v1523_v47  ;;  %v1775_v6 = vsel %vm1328_vm15, 1.0, %v2238_v60 }
 0x3db   :  { %v1653_v39 = vadd.f32 %v1775_v6, %v1652_v25 }
 0x3dc   :  { %v1610_v55 = vadd.f32 %v1609_v50, %v1579_v63 }
 0x3dd   :  { %v1533_v27 = vpop.permute.xlu1 %1532  ;;  %v1528_v2 = vpop.permute.xlu0 %1527 }
 0x3de   :  { %v1611_v59 = vadd.f32 %v1610_v55, %v1580_v15  ;;  %v1581_v1 = vmul.f32 %v2828_v16, %v1528_v2  ;;  %v1582_v31 = vmul.f32 %v2833_v20, %v1533_v27 }
 0x3e0   :  { %v1612_v36 = vadd.f32 %v1611_v59, %v1581_v1 }
 0x3e1   :  { %v1543_v4 = vpop.permute.xlu1 %1542  ;;  %v1295_v11 = vpop.permute.xlu0 %1294 }
 0x3e2   :  { %vm1329_vm0 = vcmp.eq.s32.totalorder %v1295_v11, %v2694_v56  ;;  %v1613_v37 = vadd.f32 %v1612_v36, %v1582_v31  ;;  %v1584_v10 = vmul.f32 %v1775_v6, %v1543_v4 }
 0x3e3   :  { %v1776_v8 = vsel %vm1329_vm0, 1.0, %v2238_v60 }
 0x3e4   :  { %v1654_v16 = vadd.f32 %v1776_v8, %v1653_v39 }
 0x3e5   :  { %v1538_v40 = vpop.permute.xlu1 %1537  ;;  %v1298_v33 = vpop.permute.xlu0 %1297 }
 0x3e6   :  { %v1583_v42 = vmul.f32 %v1774_v28, %v1538_v40  ;;  %vm1330_vm1 = vcmp.eq.s32.totalorder %v1298_v33, %v2694_v56 }
 0x3e7   :  { %v1777_v20 = vsel %vm1330_vm1, 1.0, %v2238_v60 }
 0x3e8   :  { %v1614_v23 = vadd.f32 %v1613_v37, %v1583_v42  ;;  %v1655_v43 = vadd.f32 %v1777_v20, %v1654_v16 }
 0x3e9   :  { %v1548_v13 = vpop.permute.xlu1 %1547  ;;  %v1553_v45 = vpop.permute.xlu0 %1552 }
 0x3ea   :  { %v1585_v32 = vmul.f32 %v1776_v8, %v1548_v13  ;;  %v1615_v46 = vadd.f32 %v1614_v23, %v1584_v10  ;;  %v1656_v17 = vrot.slane %v1655_v43, 4  ;;  %v1586_v49 = vmul.f32 %v1777_v20, %v1553_v45 }
 0x3ec   :  { %v1616_v48 = vadd.f32 %v1615_v46, %v1585_v32  ;;  %v1657_v21 = vadd.f32 %v1656_v17, %v1655_v43 }
 0x3ee   :  { %v1617_v51 = vadd.f32 %v1616_v48, %v1586_v49  ;;  %v1658_v52 = vrot.slane %v1657_v21, 2 }
 0x3f0   :  { %v1618_v24 = vrot.slane %v1617_v51, 4  ;;  %v1659_v53 = vadd.f32 %v1658_v52, %v1657_v21 }
 0x3f2   :  { %v1619_v56 = vadd.f32 %v1618_v24, %v1617_v51  ;;  %v1660_v22 = vrot.slane %v1659_v53, 1 }
 0x3f4   :  { %v1620_v60 = vrot.slane %v1619_v56, 2  ;;  %v1661_v54 = vadd.f32 %v1660_v22, %v1659_v53 }
 0x3f6   :  { %v1621_v57 = vadd.f32 %v1620_v60, %v1619_v56  ;;  %1662 = vst [vmem:[#allocation5] sm:$0x1] %v1661_v54 }
 0x3f7   :  { %2200 = shalt.err (!%p2197_p4)
}
 0x3f8   :  { %s2201_s20 = scalar_lea.hbm %s3028_s9, 16 }
 0x3f9   :  { %p2202_p5 = scmp.ne.s32.totalorder %s3028_s9, %s2201_s20  ;;  %p2205_p6 = scmp.lt.u32.totalorder %s2201_s20, %s3028_s9 }
 0x3fb   :  { %p2207_p7 = pnand %p2205_p6, %p2202_p5 }
 0x3fd   :  { %2210 = shalt.err (!%p2207_p7)
}
 0x3fe   :  { %1682 = dma.vmem_to_hbm [thread:$0]  %s1680_s0, 16, %s3028_s9, [#allocation6]   ;;  %v1622_v58 = vrot.slane %v1621_v57, 1 }
 0x3ff   :  { %s2211_s27 = scalar_lea.vmem %s1670_s17, 16  ;;  %s2215_s28 = scalar_lea.vmem %s1670_s17, 32 }
 0x400   :  { %v1623_v29 = vadd.f32 %v1622_v58, %v1621_v57  ;;  %p2212_p8 = scmp.ne.s32.totalorder %s1670_s17, %s2211_s27  ;;  %p2216_p9 = scmp.lt.s32.totalorder %s1670_s17, %s1670_s17 }
 0x401   :  { %p2217_p10 = scmp.lt.s32.totalorder %s2215_s28, %s2211_s27 }
 0x402   :  { %1624 = vst [vmem:[#allocation3] sm:$0x1] %v1623_v29 }
 0x403   :  { %p2218_p11 = por %p2217_p10, %p2216_p9 }
 0x405   :  { %p2219_p12 = pnand %p2218_p11, %p2212_p8 }
 0x407   :  { %2222 = shalt.err (!%p2219_p12)
}
 0x408   :  { %s2223_s30 = scalar_lea.hbm %s3027_s8, 16 }
 0x409   :  { %p2224_p13 = scmp.ne.s32.totalorder %s3027_s8, %s2223_s30  ;;  %p2227_p0 = scmp.lt.u32.totalorder %s2223_s30, %s3027_s8 }
 0x40b   :  { %p2229_p1 = pnand %p2227_p0, %p2224_p13 }
 0x40d   :  { %2232 = shalt.err (!%p2229_p1)
}
 0x40e   :  { %1672 = dma.vmem_to_hbm [thread:$0]  %s1670_s17, 16, %s3027_s8, [#allocation4]  }
 0x40f   :  { %2233 = dma.done.wait [#allocation4], 16  }
 0x410   :  { %2234 = vsyncadd [#allocation4], 4294967280 }
 0x411   :  { %2235 = dma.done.wait [#allocation6], 16  }
 0x412   :  { %2236 = vsyncadd [#allocation6], 4294967280 }
 0x413   :  { %1689 = vsyncpa [#allocation4], 1 }
 0x414   :  { %1690 = vsyncpa [#allocation6], 1 }

</bundles_post_ra>
